<compile_context>
chip_gen: v7x
topology: tpu7x:2x2x1
jax: 0.10.0
libtpu: 0.0.40
codegen_flags: <defaults>
</compile_context>

<pallas_src>
import math

import jax
import jax.numpy as jnp
from jax.experimental import pallas as pl
from jax.experimental.pallas import tpu as pltpu

# ---- small synthetic config (plays the role of `cfg`) ----
DIM = 32             # cfg.dim
N_HEADS = 4          # cfg.n_heads
DIM_PER_HEAD = DIM // N_HEADS
DIM_FF = 64          # cfg.dim_ff
EPS = 1e-12          # LayerNorm variance_epsilon
NEG_INF = -1000000000.0   # masked_fill value used by the PyTorch module

_SQRT_2_OVER_PI = 0.7978845608028654


# ---------------- in-kernel math helpers (traced inside the kernel) ----------------
def _gelu(x):
    # tanh-approximate GELU (runs on the EUP slot).
    # TODO(synk): PyTorch F.gelu uses exact erf; tanh form deviates by ~1e-3.
    return 0.5 * x * (1.0 + jnp.tanh(_SQRT_2_OVER_PI * (x + 0.044715 * x * x * x)))


def _layer_norm(x, gamma, beta):
    # x: [R, D], gamma/beta: [1, D]; biased variance, eps inside rsqrt (nn.LayerNorm).
    mu = jnp.mean(x, axis=-1, keepdims=True)
    var = jnp.mean(jnp.square(x - mu), axis=-1, keepdims=True)
    return (x - mu) * jax.lax.rsqrt(var + EPS) * gamma + beta


def _mha_into(attn_ref, q, k, v, bias):
    """Multi-head attention, batched over B per head.

    q: [B, Sq, D], k/v: [B, Sk, D], bias: [B, 1, Sk] additive mask (0 / -1e9).
    Writes the [B, Sq, D] result into the VMEM scratch `attn_ref`.
    No output projection (matches the PyTorch MultiHeadedAttention).
    """
    scale = 1.0 / math.sqrt(DIM_PER_HEAD)
    for h in range(N_HEADS):  # static unroll; each iter handles the whole batch
        sl = slice(h * DIM_PER_HEAD, (h + 1) * DIM_PER_HEAD)
        s = jnp.einsum("bqd,bkd->bqk", q[..., sl], k[..., sl],
                       preferred_element_type=jnp.float32) * scale + bias
        m = jnp.max(s, axis=-1, keepdims=True)
        e = jnp.exp(s - m)
        a = e / jnp.sum(e, axis=-1, keepdims=True)
        attn_ref[:, :, sl] = jnp.einsum("bqk,bkd->bqd", a, v[..., sl],
                                        preferred_element_type=jnp.float32)


# ---------------- fused DecoderBlock kernel (single invocation, whole batch) ---------
def _decoder_block_kernel(
    x_ref, enc_ref, sbias_ref, cbias_ref,
    w_in_ref,    # [D, 3D + D + 2D + DIM_FF]  : wqkv1 | wq2 | wkv2 | wf1
    wf2_ref,     # [DIM_FF, D]
    bias_ref,    # [1, 3D + D + 2D + DIM_FF + D] : bqkv1 | bq2 | bkv2 | bf1 | bf2
    ln_ref,      # [6, D] : g1, b1, g2, b2, g3, b3
    out_ref,
    attn_ref,    # VMEM scratch [B, S, D] (reused by both attentions)
):
    B, S, D = x_ref.shape
    Se = enc_ref.shape[1]
    R = B * S
    D3, D4, D6 = 3 * D, 4 * D, 6 * D
    F = wf2_ref.shape[0]

    x = x_ref[...].astype(jnp.float32).reshape(R, D)          # [B*S, D]
    enc = enc_ref[...].astype(jnp.float32).reshape(B * Se, D)  # [B*Se, D]
    sbias = sbias_ref[...]                                      # [B, 1, S]
    cbias = cbias_ref[...]                                      # [B, 1, Se]

    # ---- masked self-attention (fused QKV, M = B*S rows) + residual + LayerNorm ----
    qkv = (jnp.dot(x, w_in_ref[:, 0:D3], preferred_element_type=jnp.float32)
           + bias_ref[:, 0:D3]).reshape(B, S, D3)
    _mha_into(attn_ref, qkv[..., 0:D], qkv[..., D:2 * D], qkv[..., 2 * D:D3], sbias)
    h = _layer_norm(x + attn_ref[...].reshape(R, D), ln_ref[0:1, :], ln_ref[1:2, :])

    # ---- cross-attention on encoder output (fused KV) + residual + LayerNorm ----
    q2 = (jnp.dot(h, w_in_ref[:, D3:D4], preferred_element_type=jnp.float32)
          + bias_ref[:, D3:D4]).reshape(B, S, D)
    kv2 = (jnp.dot(enc, w_in_ref[:, D4:D6], preferred_element_type=jnp.float32)
           + bias_ref[:, D4:D6]).reshape(B, Se, 2 * D)
    _mha_into(attn_ref, q2, kv2[..., 0:D], kv2[..., D:2 * D], cbias)
    h = _layer_norm(h + attn_ref[...].reshape(R, D), ln_ref[2:3, :], ln_ref[3:4, :])

    # ---- position-wise feed-forward (GELU) + residual + LayerNorm ----
    ff = (jnp.dot(h, w_in_ref[:, D6:D6 + F], preferred_element_type=jnp.float32)
          + bias_ref[:, D6:D6 + F])
    ff = _gelu(ff)
    ff = (jnp.dot(ff, wf2_ref[...], preferred_element_type=jnp.float32)
          + bias_ref[:, D6 + F:D6 + F + D])
    h = _layer_norm(h + ff, ln_ref[4:5, :], ln_ref[5:6, :])

    out_ref[...] = h.reshape(B, S, D).astype(out_ref.dtype)


# ---------------- wrapper around pallas_call ----------------
def decoder_block_forward(x, encoder_output, self_mask, cross_mask, params):
    """Matches DecoderBlock.forward(x, encoder_output, self_mask, cross_mask)."""
    B, S, D = x.shape
    Se = encoder_output.shape[1]

    # 2-D padding masks -> additive bias [B, 1, Sk] (0.0 keep, -1e9 mask), matching
    # the PyTorch `mask.dim() == 2` broadcast over heads/queries + masked_fill.
    sbias = jnp.where(self_mask == 0, NEG_INF, 0.0).astype(jnp.float32)[:, None, :]
    cbias = jnp.where(cross_mask == 0, NEG_INF, 0.0).astype(jnp.float32)[:, None, :]

    # Pack the 16 small parameters into 4 VMEM slabs (8 total operand DMAs).
    # In a real deployment these concatenations would be done once at load time.
    w_in = jnp.concatenate(
        [params["wqkv1"], params["wq2"], params["wkv2"], params["wf1"]], axis=1)
    wf2 = params["wf2"]
    bias_slab = jnp.concatenate(
        [params["bqkv1"], params["bq2"], params["bkv2"], params["bf1"], params["bf2"]],
        axis=1)
    ln_slab = jnp.concatenate(
        [params["g1"], params["b1"], params["g2"], params["b2"],
         params["g3"], params["b3"]], axis=0)

    vmem_spec = pl.BlockSpec(memory_space=pltpu.MemorySpace.VMEM)
    return pl.pallas_call(
        _decoder_block_kernel,
        out_shape=jax.ShapeDtypeStruct((B, S, D), jnp.float32),
        in_specs=[vmem_spec] * 8,
        out_specs=vmem_spec,
        scratch_shapes=[pltpu.VMEM((B, S, D), jnp.float32)],
        compiler_params=pltpu.CompilerParams(
            vmem_limit_bytes=2 * 1024 * 1024,    # working set ~100 KB; leave headroom small
        ),
    )(x, encoder_output, sbias, cbias, w_in, wf2, bias_slab, ln_slab)


# ---------------- parameters (deterministic synthetic init) ----------------
def _dense(key, fan_in, fan_out):
    kw, kb = jax.random.split(key)
    bound = 1.0 / math.sqrt(fan_in)
    w = jax.random.uniform(kw, (fan_in, fan_out), jnp.float32, -bound, bound)
    b = jax.random.uniform(kb, (1, fan_out), jnp.float32, -bound, bound)
    return w, b


def init_params(key):
    ks = jax.random.split(key, 5)
    p = {}
    # self-attention: q/k/v fused into one [D, 3D] projection
    p["wqkv1"], p["bqkv1"] = _dense(ks[0], DIM, 3 * DIM)
    # cross-attention: q on the decoder side, k/v fused on the encoder side
    p["wq2"], p["bq2"] = _dense(ks[1], DIM, DIM)
    p["wkv2"], p["bkv2"] = _dense(ks[2], DIM, 2 * DIM)
    # feed-forward
    p["wf1"], p["bf1"] = _dense(ks[3], DIM, DIM_FF)
    p["wf2"], p["bf2"] = _dense(ks[4], DIM_FF, DIM)
    # LayerNorms
    for n in ("g1", "g2", "g3"):
        p[n] = jnp.ones((1, DIM), jnp.float32)
    for n in ("b1", "b2", "b3"):
        p[n] = jnp.zeros((1, DIM), jnp.float32)
    return p


# ---------------- pure-JAX reference (same math, for a sanity check) ----------------
def _reference(x, enc, self_mask, cross_mask, p):
    def ln(v, g, b):
        mu = v.mean(-1, keepdims=True)
        var = ((v - mu) ** 2).mean(-1, keepdims=True)
        return (v - mu) / jnp.sqrt(var + EPS) * g + b

    def mha(q_in, kv_in, mask, wq, bq, wk, bk, wv, bv):
        B, Sq, D = q_in.shape
        Sk = kv_in.shape[1]
        q = (q_in @ wq + bq).reshape(B, Sq, N_HEADS, DIM_PER_HEAD).transpose(0, 2, 1, 3)
        k = (kv_in @ wk + bk).reshape(B, Sk, N_HEADS, DIM_PER_HEAD).transpose(0, 2, 1, 3)
        v = (kv_in @ wv + bv).reshape(B, Sk, N_HEADS, DIM_PER_HEAD).transpose(0, 2, 1, 3)
        s = jnp.einsum("bhqd,bhkd->bhqk", q, k) / math.sqrt(DIM_PER_HEAD)
        s = jnp.where((mask == 0)[:, None, None, :], NEG_INF, s)
        a = jax.nn.softmax(s, axis=-1)
        o = jnp.einsum("bhqk,bhkd->bhqd", a, v)
        return o.transpose(0, 2, 1, 3).reshape(B, Sq, D)

    D = DIM
    wqkv, bqkv = p["wqkv1"], p["bqkv1"]
    h = mha(x, x, self_mask,
            wqkv[:, 0:D], bqkv[:, 0:D],
            wqkv[:, D:2 * D], bqkv[:, D:2 * D],
            wqkv[:, 2 * D:3 * D], bqkv[:, 2 * D:3 * D])
    h = ln(x + h, p["g1"], p["b1"])
    wkv, bkv = p["wkv2"], p["bkv2"]
    hc = mha(h, enc, cross_mask,
             p["wq2"], p["bq2"],
             wkv[:, 0:D], bkv[:, 0:D],
             wkv[:, D:2 * D], bkv[:, D:2 * D])
    h = ln(h + hc, p["g2"], p["b2"])
    ff = h @ p["wf1"] + p["bf1"]
    ff = 0.5 * ff * (1.0 + jnp.tanh(_SQRT_2_OVER_PI * (ff + 0.044715 * ff ** 3)))
    ff = ff @ p["wf2"] + p["bf2"]
    return ln(h + ff, p["g3"], p["b3"])


if __name__ == "__main__":
    key = jax.random.PRNGKey(0)
    kp, kx, ke = jax.random.split(key, 3)
    params = init_params(kp)

    B, S_DEC, S_ENC = 2, 8, 8
    x = jax.random.normal(kx, (B, S_DEC, DIM), jnp.float32)
    encoder_output = jax.random.normal(ke, (B, S_ENC, DIM), jnp.float32)
    # padding-style masks (1 = keep, 0 = mask out that key position)
    self_mask = jnp.ones((B, S_DEC), jnp.int32).at[1, -2:].set(0)
    cross_mask = jnp.ones((B, S_ENC), jnp.int32).at[0, -1:].set(0)

    out = decoder_block_forward(x, encoder_output, self_mask, cross_mask, params)
    out = jax.block_until_ready(out)

    ref = _reference(x, encoder_output, self_mask, cross_mask, params)
    assert out.shape == (B, S_DEC, DIM)
    assert bool(jnp.all(jnp.isfinite(out)))
    assert bool(jnp.max(jnp.abs(out - ref)) < 1e-3), float(jnp.max(jnp.abs(out - ref)))
    print("KERNEL_OK")
</pallas_src>

<mosaic_0001>
module attributes {stable_mosaic.version = 11 : i64} {
  func.func @_decoder_block_kernel(%arg0: memref<2x8x32xf32, #tpu.memory_space<vmem>>, %arg1: memref<2x8x32xf32, #tpu.memory_space<vmem>>, %arg2: memref<2x1x8xf32, #tpu.memory_space<vmem>>, %arg3: memref<2x1x8xf32, #tpu.memory_space<vmem>>, %arg4: memref<32x256xf32, #tpu.memory_space<vmem>>, %arg5: memref<64x32xf32, #tpu.memory_space<vmem>>, %arg6: memref<1x288xf32, #tpu.memory_space<vmem>>, %arg7: memref<6x32xf32, #tpu.memory_space<vmem>>, %arg8: memref<2x8x32xf32, #tpu.memory_space<vmem>>, %arg9: memref<2x8x32xf32, #tpu.memory_space<vmem>>) attributes {dimension_semantics = [], scalar_prefetch = 0 : i64, scratch_operands = 1 : i64, tpu.core_type = #tpu.core_type<tc>} {
    %c0 = arith.constant 0 : index
    %c0_0 = arith.constant 0 : index
    %c0_1 = arith.constant 0 : index
    %0 = vector.load %arg0[%c0, %c0_0, %c0_1] : memref<2x8x32xf32, #tpu.memory_space<vmem>>, vector<2x8x32xf32>
    %1 = vector.shape_cast %0 : vector<2x8x32xf32> to vector<16x32xf32>
    %c0_2 = arith.constant 0 : index
    %c0_3 = arith.constant 0 : index
    %c0_4 = arith.constant 0 : index
    %2 = vector.load %arg1[%c0_2, %c0_3, %c0_4] : memref<2x8x32xf32, #tpu.memory_space<vmem>>, vector<2x8x32xf32>
    %3 = vector.shape_cast %2 : vector<2x8x32xf32> to vector<16x32xf32>
    %c0_5 = arith.constant 0 : index
    %c0_6 = arith.constant 0 : index
    %c0_7 = arith.constant 0 : index
    %4 = vector.load %arg2[%c0_5, %c0_6, %c0_7] : memref<2x1x8xf32, #tpu.memory_space<vmem>>, vector<2x1x8xf32>
    %c0_8 = arith.constant 0 : index
    %c0_9 = arith.constant 0 : index
    %c0_10 = arith.constant 0 : index
    %5 = vector.load %arg3[%c0_8, %c0_9, %c0_10] : memref<2x1x8xf32, #tpu.memory_space<vmem>>, vector<2x1x8xf32>
    %c0_11 = arith.constant 0 : index
    %c0_12 = arith.constant 0 : index
    %6 = vector.load %arg4[%c0_11, %c0_12] : memref<32x256xf32, #tpu.memory_space<vmem>>, vector<32x96xf32>
    %cst = arith.constant dense<0.000000e+00> : vector<16x96xf32>
    %7 = tpu.matmul %1, %6, %cst {dimension_numbers = #tpu.dot_dimension_numbers<[1], [0], [0], [1], [0, 0, 1, 1], [], []>} : vector<16x32xf32>, vector<32x96xf32>, vector<16x96xf32> -> vector<16x96xf32>
    %c0_13 = arith.constant 0 : index
    %c0_14 = arith.constant 0 : index
    %8 = vector.load %arg6[%c0_13, %c0_14] : memref<1x288xf32, #tpu.memory_space<vmem>>, vector<1x96xf32>
    %9 = vector.broadcast %8 : vector<1x96xf32> to vector<16x96xf32>
    %10 = arith.addf %7, %9 : vector<16x96xf32>
    %11 = vector.shape_cast %10 : vector<16x96xf32> to vector<2x8x96xf32>
    %12 = vector.extract_strided_slice %11 {offsets = [0, 0, 0], sizes = [2, 8, 32], strides = [1, 1, 1]} : vector<2x8x96xf32> to vector<2x8x32xf32>
    %13 = vector.extract_strided_slice %11 {offsets = [0, 0, 32], sizes = [2, 8, 32], strides = [1, 1, 1]} : vector<2x8x96xf32> to vector<2x8x32xf32>
    %14 = vector.extract_strided_slice %11 {offsets = [0, 0, 64], sizes = [2, 8, 32], strides = [1, 1, 1]} : vector<2x8x96xf32> to vector<2x8x32xf32>
    %15 = vector.extract_strided_slice %12 {offsets = [0, 0, 0], sizes = [2, 8, 8], strides = [1, 1, 1]} : vector<2x8x32xf32> to vector<2x8x8xf32>
    %16 = vector.extract_strided_slice %13 {offsets = [0, 0, 0], sizes = [2, 8, 8], strides = [1, 1, 1]} : vector<2x8x32xf32> to vector<2x8x8xf32>
    "tpu.trace_start"() <{level = 10 : i32, message = "bqd,bkd->bqk"}> : () -> ()
    %cst_15 = arith.constant dense<0.000000e+00> : vector<2x8x8xf32>
    %17 = tpu.matmul %15, %16, %cst_15 {dimension_numbers = #tpu.dot_dimension_numbers<[2], [2], [1], [1], [0, 0, 0, 1, 1, 1], [0], [0]>} : vector<2x8x8xf32>, vector<2x8x8xf32>, vector<2x8x8xf32> -> vector<2x8x8xf32>
    "tpu.trace_stop"() : () -> ()
    %cst_16 = arith.constant 0.353553385 : f32
    %18 = vector.broadcast %cst_16 : f32 to vector<2x8x8xf32>
    %19 = arith.mulf %17, %18 : vector<2x8x8xf32>
    %20 = vector.broadcast %4 : vector<2x1x8xf32> to vector<2x8x8xf32>
    %21 = arith.addf %19, %20 : vector<2x8x8xf32>
    %cst_17 = arith.constant dense<0xFF800000> : vector<2x8xf32>
    %22 = vector.multi_reduction <maximumf>, %21, %cst_17 [2] : vector<2x8x8xf32> to vector<2x8xf32>
    %23 = vector.shape_cast %22 : vector<2x8xf32> to vector<2x8x1xf32>
    %24 = vector.broadcast %23 : vector<2x8x1xf32> to vector<2x8x8xf32>
    %25 = arith.subf %21, %24 : vector<2x8x8xf32>
    %26 = math.exp %25 : vector<2x8x8xf32>
    %cst_18 = arith.constant dense<0.000000e+00> : vector<2x8xf32>
    %27 = vector.multi_reduction <add>, %26, %cst_18 [2] : vector<2x8x8xf32> to vector<2x8xf32>
    %28 = vector.shape_cast %27 : vector<2x8xf32> to vector<2x8x1xf32>
    %29 = vector.broadcast %28 : vector<2x8x1xf32> to vector<2x8x8xf32>
    %30 = arith.divf %26, %29 : vector<2x8x8xf32>
    %31 = vector.extract_strided_slice %14 {offsets = [0, 0, 0], sizes = [2, 8, 8], strides = [1, 1, 1]} : vector<2x8x32xf32> to vector<2x8x8xf32>
    "tpu.trace_start"() <{level = 10 : i32, message = "bqk,bkd->bqd"}> : () -> ()
    %cst_19 = arith.constant dense<0.000000e+00> : vector<2x8x8xf32>
    %32 = tpu.matmul %30, %31, %cst_19 {dimension_numbers = #tpu.dot_dimension_numbers<[2], [1], [1], [2], [0, 0, 0, 1, 1, 2], [0], [0]>} : vector<2x8x8xf32>, vector<2x8x8xf32>, vector<2x8x8xf32> -> vector<2x8x8xf32>
    "tpu.trace_stop"() : () -> ()
    %c0_20 = arith.constant 0 : index
    %c0_21 = arith.constant 0 : index
    %c0_22 = arith.constant 0 : index
    %33 = vector.load %arg9[%c0_20, %c0_21, %c0_22] : memref<2x8x32xf32, #tpu.memory_space<vmem>>, vector<2x8x8xf32>
    tpu.vector_store %arg9[%c0_20, %c0_21, %c0_22], %32 {strides = array<i32>} : memref<2x8x32xf32, #tpu.memory_space<vmem>>, vector<2x8x8xf32>,
    %34 = vector.extract_strided_slice %12 {offsets = [0, 0, 8], sizes = [2, 8, 8], strides = [1, 1, 1]} : vector<2x8x32xf32> to vector<2x8x8xf32>
    %35 = vector.extract_strided_slice %13 {offsets = [0, 0, 8], sizes = [2, 8, 8], strides = [1, 1, 1]} : vector<2x8x32xf32> to vector<2x8x8xf32>
    "tpu.trace_start"() <{level = 10 : i32, message = "bqd,bkd->bqk"}> : () -> ()
    %cst_23 = arith.constant dense<0.000000e+00> : vector<2x8x8xf32>
    %36 = tpu.matmul %34, %35, %cst_23 {dimension_numbers = #tpu.dot_dimension_numbers<[2], [2], [1], [1], [0, 0, 0, 1, 1, 1], [0], [0]>} : vector<2x8x8xf32>, vector<2x8x8xf32>, vector<2x8x8xf32> -> vector<2x8x8xf32>
    "tpu.trace_stop"() : () -> ()
    %cst_24 = arith.constant 0.353553385 : f32
    %37 = vector.broadcast %cst_24 : f32 to vector<2x8x8xf32>
    %38 = arith.mulf %36, %37 : vector<2x8x8xf32>
    %39 = vector.broadcast %4 : vector<2x1x8xf32> to vector<2x8x8xf32>
    %40 = arith.addf %38, %39 : vector<2x8x8xf32>
    %cst_25 = arith.constant dense<0xFF800000> : vector<2x8xf32>
    %41 = vector.multi_reduction <maximumf>, %40, %cst_25 [2] : vector<2x8x8xf32> to vector<2x8xf32>
    %42 = vector.shape_cast %41 : vector<2x8xf32> to vector<2x8x1xf32>
    %43 = vector.broadcast %42 : vector<2x8x1xf32> to vector<2x8x8xf32>
    %44 = arith.subf %40, %43 : vector<2x8x8xf32>
    %45 = math.exp %44 : vector<2x8x8xf32>
    %cst_26 = arith.constant dense<0.000000e+00> : vector<2x8xf32>
    %46 = vector.multi_reduction <add>, %45, %cst_26 [2] : vector<2x8x8xf32> to vector<2x8xf32>
    %47 = vector.shape_cast %46 : vector<2x8xf32> to vector<2x8x1xf32>
    %48 = vector.broadcast %47 : vector<2x8x1xf32> to vector<2x8x8xf32>
    %49 = arith.divf %45, %48 : vector<2x8x8xf32>
    %50 = vector.extract_strided_slice %14 {offsets = [0, 0, 8], sizes = [2, 8, 8], strides = [1, 1, 1]} : vector<2x8x32xf32> to vector<2x8x8xf32>
    "tpu.trace_start"() <{level = 10 : i32, message = "bqk,bkd->bqd"}> : () -> ()
    %cst_27 = arith.constant dense<0.000000e+00> : vector<2x8x8xf32>
    %51 = tpu.matmul %49, %50, %cst_27 {dimension_numbers = #tpu.dot_dimension_numbers<[2], [1], [1], [2], [0, 0, 0, 1, 1, 2], [0], [0]>} : vector<2x8x8xf32>, vector<2x8x8xf32>, vector<2x8x8xf32> -> vector<2x8x8xf32>
    "tpu.trace_stop"() : () -> ()
    %c0_28 = arith.constant 0 : index
    %c0_29 = arith.constant 0 : index
    %c8 = arith.constant 8 : index
    %52 = vector.load %arg9[%c0_28, %c0_29, %c8] : memref<2x8x32xf32, #tpu.memory_space<vmem>>, vector<2x8x8xf32>
    tpu.vector_store %arg9[%c0_28, %c0_29, %c8], %51 {strides = array<i32>} : memref<2x8x32xf32, #tpu.memory_space<vmem>>, vector<2x8x8xf32>,
    %53 = vector.extract_strided_slice %12 {offsets = [0, 0, 16], sizes = [2, 8, 8], strides = [1, 1, 1]} : vector<2x8x32xf32> to vector<2x8x8xf32>
    %54 = vector.extract_strided_slice %13 {offsets = [0, 0, 16], sizes = [2, 8, 8], strides = [1, 1, 1]} : vector<2x8x32xf32> to vector<2x8x8xf32>
    "tpu.trace_start"() <{level = 10 : i32, message = "bqd,bkd->bqk"}> : () -> ()
    %cst_30 = arith.constant dense<0.000000e+00> : vector<2x8x8xf32>
    %55 = tpu.matmul %53, %54, %cst_30 {dimension_numbers = #tpu.dot_dimension_numbers<[2], [2], [1], [1], [0, 0, 0, 1, 1, 1], [0], [0]>} : vector<2x8x8xf32>, vector<2x8x8xf32>, vector<2x8x8xf32> -> vector<2x8x8xf32>
    "tpu.trace_stop"() : () -> ()
    %cst_31 = arith.constant 0.353553385 : f32
    %56 = vector.broadcast %cst_31 : f32 to vector<2x8x8xf32>
    %57 = arith.mulf %55, %56 : vector<2x8x8xf32>
    %58 = vector.broadcast %4 : vector<2x1x8xf32> to vector<2x8x8xf32>
    %59 = arith.addf %57, %58 : vector<2x8x8xf32>
    %cst_32 = arith.constant dense<0xFF800000> : vector<2x8xf32>
    %60 = vector.multi_reduction <maximumf>, %59, %cst_32 [2] : vector<2x8x8xf32> to vector<2x8xf32>
    %61 = vector.shape_cast %60 : vector<2x8xf32> to vector<2x8x1xf32>
    %62 = vector.broadcast %61 : vector<2x8x1xf32> to vector<2x8x8xf32>
    %63 = arith.subf %59, %62 : vector<2x8x8xf32>
    %64 = math.exp %63 : vector<2x8x8xf32>
    %cst_33 = arith.constant dense<0.000000e+00> : vector<2x8xf32>
    %65 = vector.multi_reduction <add>, %64, %cst_33 [2] : vector<2x8x8xf32> to vector<2x8xf32>
    %66 = vector.shape_cast %65 : vector<2x8xf32> to vector<2x8x1xf32>
    %67 = vector.broadcast %66 : vector<2x8x1xf32> to vector<2x8x8xf32>
    %68 = arith.divf %64, %67 : vector<2x8x8xf32>
    %69 = vector.extract_strided_slice %14 {offsets = [0, 0, 16], sizes = [2, 8, 8], strides = [1, 1, 1]} : vector<2x8x32xf32> to vector<2x8x8xf32>
    "tpu.trace_start"() <{level = 10 : i32, message = "bqk,bkd->bqd"}> : () -> ()
    %cst_34 = arith.constant dense<0.000000e+00> : vector<2x8x8xf32>
    %70 = tpu.matmul %68, %69, %cst_34 {dimension_numbers = #tpu.dot_dimension_numbers<[2], [1], [1], [2], [0, 0, 0, 1, 1, 2], [0], [0]>} : vector<2x8x8xf32>, vector<2x8x8xf32>, vector<2x8x8xf32> -> vector<2x8x8xf32>
    "tpu.trace_stop"() : () -> ()
    %c0_35 = arith.constant 0 : index
    %c0_36 = arith.constant 0 : index
    %c16 = arith.constant 16 : index
    %71 = vector.load %arg9[%c0_35, %c0_36, %c16] : memref<2x8x32xf32, #tpu.memory_space<vmem>>, vector<2x8x8xf32>
    tpu.vector_store %arg9[%c0_35, %c0_36, %c16], %70 {strides = array<i32>} : memref<2x8x32xf32, #tpu.memory_space<vmem>>, vector<2x8x8xf32>,
    %72 = vector.extract_strided_slice %12 {offsets = [0, 0, 24], sizes = [2, 8, 8], strides = [1, 1, 1]} : vector<2x8x32xf32> to vector<2x8x8xf32>
    %73 = vector.extract_strided_slice %13 {offsets = [0, 0, 24], sizes = [2, 8, 8], strides = [1, 1, 1]} : vector<2x8x32xf32> to vector<2x8x8xf32>
    "tpu.trace_start"() <{level = 10 : i32, message = "bqd,bkd->bqk"}> : () -> ()
    %cst_37 = arith.constant dense<0.000000e+00> : vector<2x8x8xf32>
    %74 = tpu.matmul %72, %73, %cst_37 {dimension_numbers = #tpu.dot_dimension_numbers<[2], [2], [1], [1], [0, 0, 0, 1, 1, 1], [0], [0]>} : vector<2x8x8xf32>, vector<2x8x8xf32>, vector<2x8x8xf32> -> vector<2x8x8xf32>
    "tpu.trace_stop"() : () -> ()
    %cst_38 = arith.constant 0.353553385 : f32
    %75 = vector.broadcast %cst_38 : f32 to vector<2x8x8xf32>
    %76 = arith.mulf %74, %75 : vector<2x8x8xf32>
    %77 = vector.broadcast %4 : vector<2x1x8xf32> to vector<2x8x8xf32>
    %78 = arith.addf %76, %77 : vector<2x8x8xf32>
    %cst_39 = arith.constant dense<0xFF800000> : vector<2x8xf32>
    %79 = vector.multi_reduction <maximumf>, %78, %cst_39 [2] : vector<2x8x8xf32> to vector<2x8xf32>
    %80 = vector.shape_cast %79 : vector<2x8xf32> to vector<2x8x1xf32>
    %81 = vector.broadcast %80 : vector<2x8x1xf32> to vector<2x8x8xf32>
    %82 = arith.subf %78, %81 : vector<2x8x8xf32>
    %83 = math.exp %82 : vector<2x8x8xf32>
    %cst_40 = arith.constant dense<0.000000e+00> : vector<2x8xf32>
    %84 = vector.multi_reduction <add>, %83, %cst_40 [2] : vector<2x8x8xf32> to vector<2x8xf32>
    %85 = vector.shape_cast %84 : vector<2x8xf32> to vector<2x8x1xf32>
    %86 = vector.broadcast %85 : vector<2x8x1xf32> to vector<2x8x8xf32>
    %87 = arith.divf %83, %86 : vector<2x8x8xf32>
    %88 = vector.extract_strided_slice %14 {offsets = [0, 0, 24], sizes = [2, 8, 8], strides = [1, 1, 1]} : vector<2x8x32xf32> to vector<2x8x8xf32>
    "tpu.trace_start"() <{level = 10 : i32, message = "bqk,bkd->bqd"}> : () -> ()
    %cst_41 = arith.constant dense<0.000000e+00> : vector<2x8x8xf32>
    %89 = tpu.matmul %87, %88, %cst_41 {dimension_numbers = #tpu.dot_dimension_numbers<[2], [1], [1], [2], [0, 0, 0, 1, 1, 2], [0], [0]>} : vector<2x8x8xf32>, vector<2x8x8xf32>, vector<2x8x8xf32> -> vector<2x8x8xf32>
    "tpu.trace_stop"() : () -> ()
    %c0_42 = arith.constant 0 : index
    %c0_43 = arith.constant 0 : index
    %c24 = arith.constant 24 : index
    %90 = vector.load %arg9[%c0_42, %c0_43, %c24] : memref<2x8x32xf32, #tpu.memory_space<vmem>>, vector<2x8x8xf32>
    tpu.vector_store %arg9[%c0_42, %c0_43, %c24], %89 {strides = array<i32>} : memref<2x8x32xf32, #tpu.memory_space<vmem>>, vector<2x8x8xf32>,
    %c0_44 = arith.constant 0 : index
    %c0_45 = arith.constant 0 : index
    %c0_46 = arith.constant 0 : index
    %91 = vector.load %arg9[%c0_44, %c0_45, %c0_46] : memref<2x8x32xf32, #tpu.memory_space<vmem>>, vector<2x8x32xf32>
    %92 = vector.shape_cast %91 : vector<2x8x32xf32> to vector<16x32xf32>
    %93 = arith.addf %1, %92 : vector<16x32xf32>
    %c0_47 = arith.constant 0 : index
    %c0_48 = arith.constant 0 : index
    %94 = vector.load %arg7[%c0_47, %c0_48] : memref<6x32xf32, #tpu.memory_space<vmem>>, vector<1x32xf32>
    %c1 = arith.constant 1 : index
    %c0_49 = arith.constant 0 : index
    %95 = vector.load %arg7[%c1, %c0_49] : memref<6x32xf32, #tpu.memory_space<vmem>>, vector<1x32xf32>
    %cst_50 = arith.constant dense<0.000000e+00> : vector<16xf32>
    %96 = vector.multi_reduction <add>, %93, %cst_50 [1] : vector<16x32xf32> to vector<16xf32>
    %97 = vector.shape_cast %96 : vector<16xf32> to vector<16x1xf32>
    %cst_51 = arith.constant 3.200000e+01 : f32
    %98 = vector.broadcast %cst_51 : f32 to vector<16x1xf32>
    %99 = arith.divf %97, %98 : vector<16x1xf32>
    %100 = vector.broadcast %99 : vector<16x1xf32> to vector<16x32xf32>
    %101 = arith.subf %93, %100 : vector<16x32xf32>
    %102 = arith.mulf %101, %101 : vector<16x32xf32>
    %cst_52 = arith.constant dense<0.000000e+00> : vector<16xf32>
    %103 = vector.multi_reduction <add>, %102, %cst_52 [1] : vector<16x32xf32> to vector<16xf32>
    %104 = vector.shape_cast %103 : vector<16xf32> to vector<16x1xf32>
    %cst_53 = arith.constant 3.200000e+01 : f32
    %105 = vector.broadcast %cst_53 : f32 to vector<16x1xf32>
    %106 = arith.divf %104, %105 : vector<16x1xf32>
    %107 = vector.broadcast %99 : vector<16x1xf32> to vector<16x32xf32>
    %108 = arith.subf %93, %107 : vector<16x32xf32>
    %cst_54 = arith.constant 9.99999996E-13 : f32
    %109 = vector.broadcast %cst_54 : f32 to vector<16x1xf32>
    %110 = arith.addf %106, %109 : vector<16x1xf32>
    %111 = math.rsqrt %110 : vector<16x1xf32>
    %112 = vector.broadcast %111 : vector<16x1xf32> to vector<16x32xf32>
    %113 = arith.mulf %108, %112 : vector<16x32xf32>
    %114 = vector.broadcast %94 : vector<1x32xf32> to vector<16x32xf32>
    %115 = arith.mulf %113, %114 : vector<16x32xf32>
    %116 = vector.broadcast %95 : vector<1x32xf32> to vector<16x32xf32>
    %117 = arith.addf %115, %116 : vector<16x32xf32>
    %c0_55 = arith.constant 0 : index
    %c96 = arith.constant 96 : index
    %118 = vector.load %arg4[%c0_55, %c96] : memref<32x256xf32, #tpu.memory_space<vmem>>, vector<32x32xf32>
    %cst_56 = arith.constant dense<0.000000e+00> : vector<16x32xf32>
    %119 = tpu.matmul %117, %118, %cst_56 {dimension_numbers = #tpu.dot_dimension_numbers<[1], [0], [0], [1], [0, 0, 1, 1], [], []>} : vector<16x32xf32>, vector<32x32xf32>, vector<16x32xf32> -> vector<16x32xf32>
    %c0_57 = arith.constant 0 : index
    %c96_58 = arith.constant 96 : index
    %120 = vector.load %arg6[%c0_57, %c96_58] : memref<1x288xf32, #tpu.memory_space<vmem>>, vector<1x32xf32>
    %121 = vector.broadcast %120 : vector<1x32xf32> to vector<16x32xf32>
    %122 = arith.addf %119, %121 : vector<16x32xf32>
    %123 = vector.shape_cast %122 : vector<16x32xf32> to vector<2x8x32xf32>
    %c0_59 = arith.constant 0 : index
    %c128 = arith.constant 128 : index
    %124 = vector.load %arg4[%c0_59, %c128] : memref<32x256xf32, #tpu.memory_space<vmem>>, vector<32x64xf32>
    %cst_60 = arith.constant dense<0.000000e+00> : vector<16x64xf32>
    %125 = tpu.matmul %3, %124, %cst_60 {dimension_numbers = #tpu.dot_dimension_numbers<[1], [0], [0], [1], [0, 0, 1, 1], [], []>} : vector<16x32xf32>, vector<32x64xf32>, vector<16x64xf32> -> vector<16x64xf32>
    %c0_61 = arith.constant 0 : index
    %c128_62 = arith.constant 128 : index
    %126 = vector.load %arg6[%c0_61, %c128_62] : memref<1x288xf32, #tpu.memory_space<vmem>>, vector<1x64xf32>
    %127 = vector.broadcast %126 : vector<1x64xf32> to vector<16x64xf32>
    %128 = arith.addf %125, %127 : vector<16x64xf32>
    %129 = vector.shape_cast %128 : vector<16x64xf32> to vector<2x8x64xf32>
    %130 = vector.extract_strided_slice %129 {offsets = [0, 0, 0], sizes = [2, 8, 32], strides = [1, 1, 1]} : vector<2x8x64xf32> to vector<2x8x32xf32>
    %131 = vector.extract_strided_slice %129 {offsets = [0, 0, 32], sizes = [2, 8, 32], strides = [1, 1, 1]} : vector<2x8x64xf32> to vector<2x8x32xf32>
    %132 = vector.extract_strided_slice %123 {offsets = [0, 0, 0], sizes = [2, 8, 8], strides = [1, 1, 1]} : vector<2x8x32xf32> to vector<2x8x8xf32>
    %133 = vector.extract_strided_slice %130 {offsets = [0, 0, 0], sizes = [2, 8, 8], strides = [1, 1, 1]} : vector<2x8x32xf32> to vector<2x8x8xf32>
    "tpu.trace_start"() <{level = 10 : i32, message = "bqd,bkd->bqk"}> : () -> ()
    %cst_63 = arith.constant dense<0.000000e+00> : vector<2x8x8xf32>
    %134 = tpu.matmul %132, %133, %cst_63 {dimension_numbers = #tpu.dot_dimension_numbers<[2], [2], [1], [1], [0, 0, 0, 1, 1, 1], [0], [0]>} : vector<2x8x8xf32>, vector<2x8x8xf32>, vector<2x8x8xf32> -> vector<2x8x8xf32>
    "tpu.trace_stop"() : () -> ()
    %cst_64 = arith.constant 0.353553385 : f32
    %135 = vector.broadcast %cst_64 : f32 to vector<2x8x8xf32>
    %136 = arith.mulf %134, %135 : vector<2x8x8xf32>
    %137 = vector.broadcast %5 : vector<2x1x8xf32> to vector<2x8x8xf32>
    %138 = arith.addf %136, %137 : vector<2x8x8xf32>
    %cst_65 = arith.constant dense<0xFF800000> : vector<2x8xf32>
    %139 = vector.multi_reduction <maximumf>, %138, %cst_65 [2] : vector<2x8x8xf32> to vector<2x8xf32>
    %140 = vector.shape_cast %139 : vector<2x8xf32> to vector<2x8x1xf32>
    %141 = vector.broadcast %140 : vector<2x8x1xf32> to vector<2x8x8xf32>
    %142 = arith.subf %138, %141 : vector<2x8x8xf32>
    %143 = math.exp %142 : vector<2x8x8xf32>
    %cst_66 = arith.constant dense<0.000000e+00> : vector<2x8xf32>
    %144 = vector.multi_reduction <add>, %143, %cst_66 [2] : vector<2x8x8xf32> to vector<2x8xf32>
    %145 = vector.shape_cast %144 : vector<2x8xf32> to vector<2x8x1xf32>
    %146 = vector.broadcast %145 : vector<2x8x1xf32> to vector<2x8x8xf32>
    %147 = arith.divf %143, %146 : vector<2x8x8xf32>
    %148 = vector.extract_strided_slice %131 {offsets = [0, 0, 0], sizes = [2, 8, 8], strides = [1, 1, 1]} : vector<2x8x32xf32> to vector<2x8x8xf32>
    "tpu.trace_start"() <{level = 10 : i32, message = "bqk,bkd->bqd"}> : () -> ()
    %cst_67 = arith.constant dense<0.000000e+00> : vector<2x8x8xf32>
    %149 = tpu.matmul %147, %148, %cst_67 {dimension_numbers = #tpu.dot_dimension_numbers<[2], [1], [1], [2], [0, 0, 0, 1, 1, 2], [0], [0]>} : vector<2x8x8xf32>, vector<2x8x8xf32>, vector<2x8x8xf32> -> vector<2x8x8xf32>
    "tpu.trace_stop"() : () -> ()
    %c0_68 = arith.constant 0 : index
    %c0_69 = arith.constant 0 : index
    %c0_70 = arith.constant 0 : index
    %150 = vector.load %arg9[%c0_68, %c0_69, %c0_70] : memref<2x8x32xf32, #tpu.memory_space<vmem>>, vector<2x8x8xf32>
    tpu.vector_store %arg9[%c0_68, %c0_69, %c0_70], %149 {strides = array<i32>} : memref<2x8x32xf32, #tpu.memory_space<vmem>>, vector<2x8x8xf32>,
    %151 = vector.extract_strided_slice %123 {offsets = [0, 0, 8], sizes = [2, 8, 8], strides = [1, 1, 1]} : vector<2x8x32xf32> to vector<2x8x8xf32>
    %152 = vector.extract_strided_slice %130 {offsets = [0, 0, 8], sizes = [2, 8, 8], strides = [1, 1, 1]} : vector<2x8x32xf32> to vector<2x8x8xf32>
    "tpu.trace_start"() <{level = 10 : i32, message = "bqd,bkd->bqk"}> : () -> ()
    %cst_71 = arith.constant dense<0.000000e+00> : vector<2x8x8xf32>
    %153 = tpu.matmul %151, %152, %cst_71 {dimension_numbers = #tpu.dot_dimension_numbers<[2], [2], [1], [1], [0, 0, 0, 1, 1, 1], [0], [0]>} : vector<2x8x8xf32>, vector<2x8x8xf32>, vector<2x8x8xf32> -> vector<2x8x8xf32>
    "tpu.trace_stop"() : () -> ()
    %cst_72 = arith.constant 0.353553385 : f32
    %154 = vector.broadcast %cst_72 : f32 to vector<2x8x8xf32>
    %155 = arith.mulf %153, %154 : vector<2x8x8xf32>
    %156 = vector.broadcast %5 : vector<2x1x8xf32> to vector<2x8x8xf32>
    %157 = arith.addf %155, %156 : vector<2x8x8xf32>
    %cst_73 = arith.constant dense<0xFF800000> : vector<2x8xf32>
    %158 = vector.multi_reduction <maximumf>, %157, %cst_73 [2] : vector<2x8x8xf32> to vector<2x8xf32>
    %159 = vector.shape_cast %158 : vector<2x8xf32> to vector<2x8x1xf32>
    %160 = vector.broadcast %159 : vector<2x8x1xf32> to vector<2x8x8xf32>
    %161 = arith.subf %157, %160 : vector<2x8x8xf32>
    %162 = math.exp %161 : vector<2x8x8xf32>
    %cst_74 = arith.constant dense<0.000000e+00> : vector<2x8xf32>
    %163 = vector.multi_reduction <add>, %162, %cst_74 [2] : vector<2x8x8xf32> to vector<2x8xf32>
    %164 = vector.shape_cast %163 : vector<2x8xf32> to vector<2x8x1xf32>
    %165 = vector.broadcast %164 : vector<2x8x1xf32> to vector<2x8x8xf32>
    %166 = arith.divf %162, %165 : vector<2x8x8xf32>
    %167 = vector.extract_strided_slice %131 {offsets = [0, 0, 8], sizes = [2, 8, 8], strides = [1, 1, 1]} : vector<2x8x32xf32> to vector<2x8x8xf32>
    "tpu.trace_start"() <{level = 10 : i32, message = "bqk,bkd->bqd"}> : () -> ()
    %cst_75 = arith.constant dense<0.000000e+00> : vector<2x8x8xf32>
    %168 = tpu.matmul %166, %167, %cst_75 {dimension_numbers = #tpu.dot_dimension_numbers<[2], [1], [1], [2], [0, 0, 0, 1, 1, 2], [0], [0]>} : vector<2x8x8xf32>, vector<2x8x8xf32>, vector<2x8x8xf32> -> vector<2x8x8xf32>
    "tpu.trace_stop"() : () -> ()
    %c0_76 = arith.constant 0 : index
    %c0_77 = arith.constant 0 : index
    %c8_78 = arith.constant 8 : index
    %169 = vector.load %arg9[%c0_76, %c0_77, %c8_78] : memref<2x8x32xf32, #tpu.memory_space<vmem>>, vector<2x8x8xf32>
    tpu.vector_store %arg9[%c0_76, %c0_77, %c8_78], %168 {strides = array<i32>} : memref<2x8x32xf32, #tpu.memory_space<vmem>>, vector<2x8x8xf32>,
    %170 = vector.extract_strided_slice %123 {offsets = [0, 0, 16], sizes = [2, 8, 8], strides = [1, 1, 1]} : vector<2x8x32xf32> to vector<2x8x8xf32>
    %171 = vector.extract_strided_slice %130 {offsets = [0, 0, 16], sizes = [2, 8, 8], strides = [1, 1, 1]} : vector<2x8x32xf32> to vector<2x8x8xf32>
    "tpu.trace_start"() <{level = 10 : i32, message = "bqd,bkd->bqk"}> : () -> ()
    %cst_79 = arith.constant dense<0.000000e+00> : vector<2x8x8xf32>
    %172 = tpu.matmul %170, %171, %cst_79 {dimension_numbers = #tpu.dot_dimension_numbers<[2], [2], [1], [1], [0, 0, 0, 1, 1, 1], [0], [0]>} : vector<2x8x8xf32>, vector<2x8x8xf32>, vector<2x8x8xf32> -> vector<2x8x8xf32>
    "tpu.trace_stop"() : () -> ()
    %cst_80 = arith.constant 0.353553385 : f32
    %173 = vector.broadcast %cst_80 : f32 to vector<2x8x8xf32>
    %174 = arith.mulf %172, %173 : vector<2x8x8xf32>
    %175 = vector.broadcast %5 : vector<2x1x8xf32> to vector<2x8x8xf32>
    %176 = arith.addf %174, %175 : vector<2x8x8xf32>
    %cst_81 = arith.constant dense<0xFF800000> : vector<2x8xf32>
    %177 = vector.multi_reduction <maximumf>, %176, %cst_81 [2] : vector<2x8x8xf32> to vector<2x8xf32>
    %178 = vector.shape_cast %177 : vector<2x8xf32> to vector<2x8x1xf32>
    %179 = vector.broadcast %178 : vector<2x8x1xf32> to vector<2x8x8xf32>
    %180 = arith.subf %176, %179 : vector<2x8x8xf32>
    %181 = math.exp %180 : vector<2x8x8xf32>
    %cst_82 = arith.constant dense<0.000000e+00> : vector<2x8xf32>
    %182 = vector.multi_reduction <add>, %181, %cst_82 [2] : vector<2x8x8xf32> to vector<2x8xf32>
    %183 = vector.shape_cast %182 : vector<2x8xf32> to vector<2x8x1xf32>
    %184 = vector.broadcast %183 : vector<2x8x1xf32> to vector<2x8x8xf32>
    %185 = arith.divf %181, %184 : vector<2x8x8xf32>
    %186 = vector.extract_strided_slice %131 {offsets = [0, 0, 16], sizes = [2, 8, 8], strides = [1, 1, 1]} : vector<2x8x32xf32> to vector<2x8x8xf32>
    "tpu.trace_start"() <{level = 10 : i32, message = "bqk,bkd->bqd"}> : () -> ()
    %cst_83 = arith.constant dense<0.000000e+00> : vector<2x8x8xf32>
    %187 = tpu.matmul %185, %186, %cst_83 {dimension_numbers = #tpu.dot_dimension_numbers<[2], [1], [1], [2], [0, 0, 0, 1, 1, 2], [0], [0]>} : vector<2x8x8xf32>, vector<2x8x8xf32>, vector<2x8x8xf32> -> vector<2x8x8xf32>
    "tpu.trace_stop"() : () -> ()
    %c0_84 = arith.constant 0 : index
    %c0_85 = arith.constant 0 : index
    %c16_86 = arith.constant 16 : index
    %188 = vector.load %arg9[%c0_84, %c0_85, %c16_86] : memref<2x8x32xf32, #tpu.memory_space<vmem>>, vector<2x8x8xf32>
    tpu.vector_store %arg9[%c0_84, %c0_85, %c16_86], %187 {strides = array<i32>} : memref<2x8x32xf32, #tpu.memory_space<vmem>>, vector<2x8x8xf32>,
    %189 = vector.extract_strided_slice %123 {offsets = [0, 0, 24], sizes = [2, 8, 8], strides = [1, 1, 1]} : vector<2x8x32xf32> to vector<2x8x8xf32>
    %190 = vector.extract_strided_slice %130 {offsets = [0, 0, 24], sizes = [2, 8, 8], strides = [1, 1, 1]} : vector<2x8x32xf32> to vector<2x8x8xf32>
    "tpu.trace_start"() <{level = 10 : i32, message = "bqd,bkd->bqk"}> : () -> ()
    %cst_87 = arith.constant dense<0.000000e+00> : vector<2x8x8xf32>
    %191 = tpu.matmul %189, %190, %cst_87 {dimension_numbers = #tpu.dot_dimension_numbers<[2], [2], [1], [1], [0, 0, 0, 1, 1, 1], [0], [0]>} : vector<2x8x8xf32>, vector<2x8x8xf32>, vector<2x8x8xf32> -> vector<2x8x8xf32>
    "tpu.trace_stop"() : () -> ()
    %cst_88 = arith.constant 0.353553385 : f32
    %192 = vector.broadcast %cst_88 : f32 to vector<2x8x8xf32>
    %193 = arith.mulf %191, %192 : vector<2x8x8xf32>
    %194 = vector.broadcast %5 : vector<2x1x8xf32> to vector<2x8x8xf32>
    %195 = arith.addf %193, %194 : vector<2x8x8xf32>
    %cst_89 = arith.constant dense<0xFF800000> : vector<2x8xf32>
    %196 = vector.multi_reduction <maximumf>, %195, %cst_89 [2] : vector<2x8x8xf32> to vector<2x8xf32>
    %197 = vector.shape_cast %196 : vector<2x8xf32> to vector<2x8x1xf32>
    %198 = vector.broadcast %197 : vector<2x8x1xf32> to vector<2x8x8xf32>
    %199 = arith.subf %195, %198 : vector<2x8x8xf32>
    %200 = math.exp %199 : vector<2x8x8xf32>
    %cst_90 = arith.constant dense<0.000000e+00> : vector<2x8xf32>
    %201 = vector.multi_reduction <add>, %200, %cst_90 [2] : vector<2x8x8xf32> to vector<2x8xf32>
    %202 = vector.shape_cast %201 : vector<2x8xf32> to vector<2x8x1xf32>
    %203 = vector.broadcast %202 : vector<2x8x1xf32> to vector<2x8x8xf32>
    %204 = arith.divf %200, %203 : vector<2x8x8xf32>
    %205 = vector.extract_strided_slice %131 {offsets = [0, 0, 24], sizes = [2, 8, 8], strides = [1, 1, 1]} : vector<2x8x32xf32> to vector<2x8x8xf32>
    "tpu.trace_start"() <{level = 10 : i32, message = "bqk,bkd->bqd"}> : () -> ()
    %cst_91 = arith.constant dense<0.000000e+00> : vector<2x8x8xf32>
    %206 = tpu.matmul %204, %205, %cst_91 {dimension_numbers = #tpu.dot_dimension_numbers<[2], [1], [1], [2], [0, 0, 0, 1, 1, 2], [0], [0]>} : vector<2x8x8xf32>, vector<2x8x8xf32>, vector<2x8x8xf32> -> vector<2x8x8xf32>
    "tpu.trace_stop"() : () -> ()
    %c0_92 = arith.constant 0 : index
    %c0_93 = arith.constant 0 : index
    %c24_94 = arith.constant 24 : index
    %207 = vector.load %arg9[%c0_92, %c0_93, %c24_94] : memref<2x8x32xf32, #tpu.memory_space<vmem>>, vector<2x8x8xf32>
    tpu.vector_store %arg9[%c0_92, %c0_93, %c24_94], %206 {strides = array<i32>} : memref<2x8x32xf32, #tpu.memory_space<vmem>>, vector<2x8x8xf32>,
    %c0_95 = arith.constant 0 : index
    %c0_96 = arith.constant 0 : index
    %c0_97 = arith.constant 0 : index
    %208 = vector.load %arg9[%c0_95, %c0_96, %c0_97] : memref<2x8x32xf32, #tpu.memory_space<vmem>>, vector<2x8x32xf32>
    %209 = vector.shape_cast %208 : vector<2x8x32xf32> to vector<16x32xf32>
    %210 = arith.addf %117, %209 : vector<16x32xf32>
    %c2 = arith.constant 2 : index
    %c0_98 = arith.constant 0 : index
    %211 = vector.load %arg7[%c2, %c0_98] : memref<6x32xf32, #tpu.memory_space<vmem>>, vector<1x32xf32>
    %c3 = arith.constant 3 : index
    %c0_99 = arith.constant 0 : index
    %212 = vector.load %arg7[%c3, %c0_99] : memref<6x32xf32, #tpu.memory_space<vmem>>, vector<1x32xf32>
    %cst_100 = arith.constant dense<0.000000e+00> : vector<16xf32>
    %213 = vector.multi_reduction <add>, %210, %cst_100 [1] : vector<16x32xf32> to vector<16xf32>
    %214 = vector.shape_cast %213 : vector<16xf32> to vector<16x1xf32>
    %cst_101 = arith.constant 3.200000e+01 : f32
    %215 = vector.broadcast %cst_101 : f32 to vector<16x1xf32>
    %216 = arith.divf %214, %215 : vector<16x1xf32>
    %217 = vector.broadcast %216 : vector<16x1xf32> to vector<16x32xf32>
    %218 = arith.subf %210, %217 : vector<16x32xf32>
    %219 = arith.mulf %218, %218 : vector<16x32xf32>
    %cst_102 = arith.constant dense<0.000000e+00> : vector<16xf32>
    %220 = vector.multi_reduction <add>, %219, %cst_102 [1] : vector<16x32xf32> to vector<16xf32>
    %221 = vector.shape_cast %220 : vector<16xf32> to vector<16x1xf32>
    %cst_103 = arith.constant 3.200000e+01 : f32
    %222 = vector.broadcast %cst_103 : f32 to vector<16x1xf32>
    %223 = arith.divf %221, %222 : vector<16x1xf32>
    %224 = vector.broadcast %216 : vector<16x1xf32> to vector<16x32xf32>
    %225 = arith.subf %210, %224 : vector<16x32xf32>
    %cst_104 = arith.constant 9.99999996E-13 : f32
    %226 = vector.broadcast %cst_104 : f32 to vector<16x1xf32>
    %227 = arith.addf %223, %226 : vector<16x1xf32>
    %228 = math.rsqrt %227 : vector<16x1xf32>
    %229 = vector.broadcast %228 : vector<16x1xf32> to vector<16x32xf32>
    %230 = arith.mulf %225, %229 : vector<16x32xf32>
    %231 = vector.broadcast %211 : vector<1x32xf32> to vector<16x32xf32>
    %232 = arith.mulf %230, %231 : vector<16x32xf32>
    %233 = vector.broadcast %212 : vector<1x32xf32> to vector<16x32xf32>
    %234 = arith.addf %232, %233 : vector<16x32xf32>
    %c0_105 = arith.constant 0 : index
    %c192 = arith.constant 192 : index
    %235 = vector.load %arg4[%c0_105, %c192] : memref<32x256xf32, #tpu.memory_space<vmem>>, vector<32x64xf32>
    %cst_106 = arith.constant dense<0.000000e+00> : vector<16x64xf32>
    %236 = tpu.matmul %234, %235, %cst_106 {dimension_numbers = #tpu.dot_dimension_numbers<[1], [0], [0], [1], [0, 0, 1, 1], [], []>} : vector<16x32xf32>, vector<32x64xf32>, vector<16x64xf32> -> vector<16x64xf32>
    %c0_107 = arith.constant 0 : index
    %c192_108 = arith.constant 192 : index
    %237 = vector.load %arg6[%c0_107, %c192_108] : memref<1x288xf32, #tpu.memory_space<vmem>>, vector<1x64xf32>
    %238 = vector.broadcast %237 : vector<1x64xf32> to vector<16x64xf32>
    %239 = arith.addf %236, %238 : vector<16x64xf32>
    %cst_109 = arith.constant 5.000000e-01 : f32
    %240 = vector.broadcast %cst_109 : f32 to vector<16x64xf32>
    %241 = arith.mulf %240, %239 : vector<16x64xf32>
    %cst_110 = arith.constant 4.471500e-02 : f32
    %242 = vector.broadcast %cst_110 : f32 to vector<16x64xf32>
    %243 = arith.mulf %242, %239 : vector<16x64xf32>
    %244 = arith.mulf %243, %239 : vector<16x64xf32>
    %245 = arith.mulf %244, %239 : vector<16x64xf32>
    %246 = arith.addf %239, %245 : vector<16x64xf32>
    %cst_111 = arith.constant 0.797884583 : f32
    %247 = vector.broadcast %cst_111 : f32 to vector<16x64xf32>
    %248 = arith.mulf %247, %246 : vector<16x64xf32>
    %249 = math.tanh %248 : vector<16x64xf32>
    %cst_112 = arith.constant 1.000000e+00 : f32
    %250 = vector.broadcast %cst_112 : f32 to vector<16x64xf32>
    %251 = arith.addf %250, %249 : vector<16x64xf32>
    %252 = arith.mulf %241, %251 : vector<16x64xf32>
    %c0_113 = arith.constant 0 : index
    %c0_114 = arith.constant 0 : index
    %253 = vector.load %arg5[%c0_113, %c0_114] : memref<64x32xf32, #tpu.memory_space<vmem>>, vector<64x32xf32>
    %cst_115 = arith.constant dense<0.000000e+00> : vector<16x32xf32>
    %254 = tpu.matmul %252, %253, %cst_115 {dimension_numbers = #tpu.dot_dimension_numbers<[1], [0], [0], [1], [0, 0, 1, 1], [], []>} : vector<16x64xf32>, vector<64x32xf32>, vector<16x32xf32> -> vector<16x32xf32>
    %c0_116 = arith.constant 0 : index
    %c256 = arith.constant 256 : index
    %255 = vector.load %arg6[%c0_116, %c256] : memref<1x288xf32, #tpu.memory_space<vmem>>, vector<1x32xf32>
    %256 = vector.broadcast %255 : vector<1x32xf32> to vector<16x32xf32>
    %257 = arith.addf %254, %256 : vector<16x32xf32>
    %258 = arith.addf %234, %257 : vector<16x32xf32>
    %c4 = arith.constant 4 : index
    %c0_117 = arith.constant 0 : index
    %259 = vector.load %arg7[%c4, %c0_117] : memref<6x32xf32, #tpu.memory_space<vmem>>, vector<1x32xf32>
    %c5 = arith.constant 5 : index
    %c0_118 = arith.constant 0 : index
    %260 = vector.load %arg7[%c5, %c0_118] : memref<6x32xf32, #tpu.memory_space<vmem>>, vector<1x32xf32>
    %cst_119 = arith.constant dense<0.000000e+00> : vector<16xf32>
    %261 = vector.multi_reduction <add>, %258, %cst_119 [1] : vector<16x32xf32> to vector<16xf32>
    %262 = vector.shape_cast %261 : vector<16xf32> to vector<16x1xf32>
    %cst_120 = arith.constant 3.200000e+01 : f32
    %263 = vector.broadcast %cst_120 : f32 to vector<16x1xf32>
    %264 = arith.divf %262, %263 : vector<16x1xf32>
    %265 = vector.broadcast %264 : vector<16x1xf32> to vector<16x32xf32>
    %266 = arith.subf %258, %265 : vector<16x32xf32>
    %267 = arith.mulf %266, %266 : vector<16x32xf32>
    %cst_121 = arith.constant dense<0.000000e+00> : vector<16xf32>
    %268 = vector.multi_reduction <add>, %267, %cst_121 [1] : vector<16x32xf32> to vector<16xf32>
    %269 = vector.shape_cast %268 : vector<16xf32> to vector<16x1xf32>
    %cst_122 = arith.constant 3.200000e+01 : f32
    %270 = vector.broadcast %cst_122 : f32 to vector<16x1xf32>
    %271 = arith.divf %269, %270 : vector<16x1xf32>
    %272 = vector.broadcast %264 : vector<16x1xf32> to vector<16x32xf32>
    %273 = arith.subf %258, %272 : vector<16x32xf32>
    %cst_123 = arith.constant 9.99999996E-13 : f32
    %274 = vector.broadcast %cst_123 : f32 to vector<16x1xf32>
    %275 = arith.addf %271, %274 : vector<16x1xf32>
    %276 = math.rsqrt %275 : vector<16x1xf32>
    %277 = vector.broadcast %276 : vector<16x1xf32> to vector<16x32xf32>
    %278 = arith.mulf %273, %277 : vector<16x32xf32>
    %279 = vector.broadcast %259 : vector<1x32xf32> to vector<16x32xf32>
    %280 = arith.mulf %278, %279 : vector<16x32xf32>
    %281 = vector.broadcast %260 : vector<1x32xf32> to vector<16x32xf32>
    %282 = arith.addf %280, %281 : vector<16x32xf32>
    %283 = vector.shape_cast %282 : vector<16x32xf32> to vector<2x8x32xf32>
    %c0_124 = arith.constant 0 : index
    %c0_125 = arith.constant 0 : index
    %c0_126 = arith.constant 0 : index
    %284 = vector.load %arg8[%c0_124, %c0_125, %c0_126] : memref<2x8x32xf32, #tpu.memory_space<vmem>>, vector<2x8x32xf32>
    tpu.vector_store %arg8[%c0_124, %c0_125, %c0_126], %283 {strides = array<i32>} : memref<2x8x32xf32, #tpu.memory_space<vmem>>, vector<2x8x32xf32>,
    return
  }
}

</mosaic_0001>

<bundles_post_ra>
// kernel: tpu_custom_call.1
= control target key start
LH: loop header
LB: loop body
LE: loop exit
PB: predicated region body
PF: predicated region fallthrough
CT: control target
= control target key end

     0   :  { %vm49_vm0 = vcmask 261120   ;;  %s4647_s0 = inlined_call_operand.vmem [shape: f32[2,8,32], index: 0, kind: input, shape index: {}]   ;;  %s4648_s1 = inlined_call_operand.vmem [shape: f32[2,8,32], index: 1, kind: input, shape index: {}]   ;;  %s4649_s2 = inlined_call_operand.vmem [shape: f32[2,1,8], index: 2, kind: input, shape index: {}]   ;;  %s4650_s3 = inlined_call_operand.vmem [shape: f32[2,1,8], index: 3, kind: input, shape index: {}]   ;;  %s4651_s4 = inlined_call_operand.vmem [shape: f32[32,256], index: 4, kind: input, shape index: {}]   ;;  %s4652_s5 = inlined_call_operand.vmem [shape: f32[64,32], index: 5, kind: input, shape index: {}]   ;;  %s4653_s6 = inlined_call_operand.vmem [shape: f32[1,288], index: 6, kind: input, shape index: {}]   ;;  %s4654_s7 = inlined_call_operand.vmem [shape: f32[6,32], index: 7, kind: input, shape index: {}]   ;;  %s4655_s8 = inlined_call_operand.hbm [shape: f32[2,8,32], index: 8, kind: output, shape index: {}]  }
   0x1   :  { %v4117_v0 = vld [vmem:[%s4651_s4] sm:$0xff]  ;;  %v4122_v1 = vld [vmem:[%s4651_s4 + $0x10] sm:$0xff] }
   0x2   :  { %v4127_v2 = vld [vmem:[%s4651_s4 + $0x20] sm:$0xff]  ;;  %v3859_v3 = vpack.c.bf16 %v4122_v1, %v4117_v0  ;;  %v4134_v4 = vld [vmem:[%s4651_s4 + $0x30] sm:$0xff] }
   0x3   :  { %v4139_v5 = vld [vmem:[%s4647_s0] sm:$0xff]  ;;  %v3863_v6 = vpack.c.bf16 %v4134_v4, %v4127_v2 }
   0x4   :  { %3644 = vmatprep.mubr.msk.f32.mxu0 %vm49_vm0, %v4139_v5 }
   0x5   :  { %13 = vsyncpa [#allocation4], 0  ;;  %3860 = vmatprep.subr.bf16.mxu0 %v3859_v3  ;;  %v4148_v7 = vld [vmem:[%s4647_s0 + $0x8] sm:$0xff]  ;;  %v4050_v8 = vmov 0.0   ;;  %vm4051_vm1 = vmmov 0   ;;  %s4052_s0 = smov 96  }
   0x6   :  { %3862 = vmatpush3.bf16.msra.mxu0 %v3859_v3  ;;  %3652 = vmatprep.subr.mxu1 %v4050_v8  ;;  %v4161_v9 = vld [vmem:[%s4653_s6] ss:$0 sm:$0xff]  ;;  %vm134_vm2 = vcmask 64512   ;;  %v4194_v22 = vld [vmem:[%s4649_s2 + $0x1] ss:$0 sm:$0xff]  ;;  %s4053_s23 = smov 64  }
   0x7   :  { %3864 = vmatprep.subr.bf16.mxu0 %v3863_v6  ;;  %3654 = vmatprep.mubr.msk.f32.mxu1 %vm4051_vm1, %v4050_v8  ;;  %v4188_v17 = vld [vmem:[%s4649_s2] ss:$0 sm:$0xff]  ;;  %s4054_s24 = smov 88   ;;  %s4055_s2 = smov 120   ;;  %vm820_vm3 = vcmask 130112   ;;  %vm1165_vm4 = vcmask 195712  }
   0x8   :  { %s4056_s25 = smov 56   ;;  %s4057_s26 = smov 80   ;;  %vm1510_vm5 = vcmask 261312   ;;  %vm3323_vm6 = vcmask 523264  }
   0x9   :  { %s4058_s27 = smov 112   ;;  %s4059_s28 = smov 48  }
   0xa   :  { %3866 = vmatpush3.bf16.msra.mxu0 %v3863_v6  ;;  %s4060_s29 = smov 72   ;;  %s4061_s30 = smov 104  }
   0xb   :  { %3647 = vmatprep.subr.mxu0 %v4050_v8  ;;  %s4062_s9 = smov 40   ;;  %s4063_s10 = smov 8  }
   0xc   :  { %s4064_s11 = smov 16   ;;  %s4065_s12 = smov 24  }
   0xd   :  { %3645 = vmatmul.mubr.msk.f32.vlgmr.msra.gmra.mrb[0].mxu0 %vm49_vm0, %v4148_v7  ;;  %s4066_s13 = smov 32   ;;  %s4067_s19 = smov [#allocation3]  }
   0xe   :  { %3649 = vmatprep.mubr.msk.f32.mxu0 %vm4051_vm1, %v4050_v8  ;;  %s3454_s20 = sshll.u32 %s4067_s19, 4  ;;  %s3455_s20 = int_to_ptr.vmem [resolvable:$true] %s3454_s20 }
   0xf   :  { %p4031_p1 = scmp.lt.s32.totalorder %s3455_s20, %s3455_s20 }
  0xe0   :  { %v3646_v10 = vpop.f32.mrb[0].mxu0 }
  0xe1   :  { %v122_v11 = vpop.f32.mrb[1].mxu0  ;;  %v4169_v13 = vadd.f32 %v3646_v10, %v4161_v9 }
  0xe2   :  { %v4164_v12 = vadd.f32 %v4161_v9, %v122_v11 }
  0xe4   :  { %132 = vrot.lane.b32.xlu0 %v4164_v12, %s4052_s0 }
  0xe8   :  { %210 = vrot.lane.b32.xlu0 %v4169_v13, %s4052_s0 }
 0x156   :  { %v133_v14 = vpop.permute.xlu0 %132 }
 0x157   :  { %3648 = vmatpush3.xpose.msk.msra.mxu0 %vm134_vm2, %v133_v14 }
 0x158   :  { %3657 = vmatprep.subr.mxu0 %v4050_v8 }
 0x15a   :  { %3650 = vmatmul.mubr.msk.f32.vlgmr.msra.gmra.mrb[2].mxu0 %vm134_vm2, %v4164_v12  ;;  %v211_v15 = vpop.permute.xlu0 %210 }
 0x15b   :  { %3653 = vmatpush3.xpose.msk.msra.mxu1 %vm134_vm2, %v211_v15  ;;  %3659 = vmatprep.mubr.msk.f32.mxu0 %vm4051_vm1, %v4050_v8 }
 0x15c   :  { %3662 = vmatprep.subr.mxu1 %v4050_v8 }
 0x15e   :  { %3655 = vmatmul.mubr.msk.f32.vlgmr.msra.gmra.mrb[0].mxu1 %vm134_vm2, %v4169_v13 }
 0x15f   :  { %3664 = vmatprep.mubr.msk.f32.mxu1 %vm4051_vm1, %v4050_v8 }
 0x22d   :  { %v205_v16 = vpop.f32.mrb[2].mxu0 }
 0x22e   :  { %v286_v18 = vmul.f32 0.35355338, %v205_v16  ;;  %v3651_v19 = vpop.f32.mrb[3].mxu0 }
 0x230   :  { %v300_v20 = vadd.f32 %v4188_v17, %v286_v18 }
 0x231   :  { %v282_v21 = vpop.f32.mrb[0].mxu1 }
 0x232   :  { %v287_v23 = vmul.f32 0.35355338, %v282_v21  ;;  %v3656_v24 = vpop.f32.mrb[1].mxu1  ;;  %v302_v25 = vsel %vm134_vm2, %v300_v20, -inf }
 0x233   :  { %303 = vmax.xlane.f32.xlu1 %v302_v25 }
 0x234   :  { %v301_v26 = vadd.f32 %v4194_v22, %v287_v23 }
 0x236   :  { %v305_v27 = vsel %vm134_vm2, %v301_v26, -inf }
 0x237   :  { %306 = vmax.xlane.f32.xlu1 %v305_v27 }
 0x248   :  { %324 = vrot.lane.b32.xlu1 %v4164_v12, %s4053_s23 }
 0x24c   :  { %400 = vrot.lane.b32.xlu1 %v4169_v13, %s4053_s23 }
 0x250   :  { %480 = vrot.lane.b32.xlu1 %v4164_v12, %s4054_s24 }
 0x254   :  { %558 = vrot.lane.b32.xlu1 %v4169_v13, %s4054_s24 }
 0x2c0   :  { %v304_v28 = vpop.xlane.xlu1 %303 }
 0x2c1   :  { %v308_v29 = vsub.f32 %v300_v20, %v304_v28 }
 0x2c3   :  { %v310_v30 = vmul.f32 1.442695, %v308_v29 }
 0x2c4   :  { %v307_v31 = vpop.xlane.xlu1 %306 }
 0x2c5   :  { %3946 = vpow2.f32 %v310_v30  ;;  %v309_v32 = vsub.f32 %v301_v26, %v307_v31 }
 0x2c7   :  { %v312_v33 = vmul.f32 1.442695, %v309_v32 }
 0x2c8   :  { %v325_v34 = vpop.permute.xlu1 %324 }
 0x2c9   :  { %3948 = vpow2.f32 %v312_v33  ;;  %3658 = vmatpush3.msra.mxu0 %v325_v34 }
 0x2ca   :  { %3667 = vmatprep.subr.mxu0 %v4050_v8 }
 0x2cc   :  { %v401_v35 = vpop.permute.xlu1 %400 }
 0x2cd   :  { %3663 = vmatpush3.msra.mxu1 %v401_v35 }
 0x2ce   :  { %3672 = vmatprep.subr.mxu1 %v4050_v8 }
 0x2cf   :  { %v3947_v36 = vpop.eup %3946 }
 0x2d0   :  { %v314_v37 = vsel %vm134_vm2, %v3947_v36, 0.0  ;;  %v481_v40 = vpop.permute.xlu1 %480 }
 0x2d1   :  { %315 = vadd.xlane.f32.xlu0 %v314_v37 }
 0x2d3   :  { %v3949_v38 = vpop.eup %3948 }
 0x2d4   :  { %v317_v39 = vsel %vm134_vm2, %v3949_v38, 0.0  ;;  %v559_v41 = vpop.permute.xlu1 %558 }
 0x2d5   :  { %318 = vadd.xlane.f32.xlu1 %v317_v39 }
 0x2e6   :  { %556 = vrot.lane.b32.xlu1 %v4169_v13, %s4055_s2 }
 0x2e7   :  { %478 = vrot.lane.b32.xlu0 %v4164_v12, %s4055_s2 }
 0x35e   :  { %v316_v42 = vpop.xlane.xlu0 %315 }
 0x35f   :  { %3950 = vrcp.f32 %v316_v42 }
 0x362   :  { %v319_v43 = vpop.xlane.xlu1 %318  ;;  %v479_v48 = vpop.permute.xlu0 %478 }
 0x363   :  { %3952 = vrcp.f32 %v319_v43 }
 0x366   :  { %v557_v49 = vpop.permute.xlu1 %556 }
 0x369   :  { %v3951_v44 = vpop.eup %3950 }
 0x36a   :  { %v321_v45 = vmul.f32 %v3951_v44, %v3947_v36 }
 0x36c   :  { %3660 = vmatmul.mubr.msk.f32.vlgmr.msra.gmra.mrb[4].mxu0 %vm134_vm2, %v321_v45 }
 0x36d   :  { %v3953_v46 = vpop.eup %3952  ;;  %3668 = vmatpush3.xpose.msk.msra.mxu0 %vm134_vm2, %v481_v40  ;;  %3669 = vmatprep.mubr.msk.f32.mxu0 %vm4051_vm1, %v4050_v8 }
 0x36e   :  { %v323_v47 = vmul.f32 %v3953_v46, %v3949_v38  ;;  %3677 = vmatprep.subr.mxu0 %v4050_v8 }
 0x370   :  { %3665 = vmatmul.mubr.msk.f32.vlgmr.msra.gmra.mrb[2].mxu1 %vm134_vm2, %v323_v47  ;;  %3670 = vmatmul.mubr.msk.f32.vlgmr.msra.gmra.mrb[6].mxu0 %vm134_vm2, %v479_v48 }
 0x371   :  { %3673 = vmatpush3.xpose.msk.msra.mxu1 %vm134_vm2, %v559_v41  ;;  %3674 = vmatprep.mubr.msk.f32.mxu1 %vm4051_vm1, %v4050_v8 }
 0x372   :  { %3682 = vmatprep.subr.mxu1 %v4050_v8  ;;  %3679 = vmatprep.mubr.msk.f32.mxu0 %vm4051_vm1, %v4050_v8 }
 0x374   :  { %3675 = vmatmul.mubr.msk.f32.vlgmr.msra.gmra.mrb[4].mxu1 %vm134_vm2, %v557_v49 }
 0x375   :  { %3684 = vmatprep.mubr.msk.f32.mxu1 %vm4051_vm1, %v4050_v8 }
 0x43f   :  { %v396_v50 = vpop.f32.mrb[4].mxu0 }
 0x440   :  { %476 = vst.msk [vmem:[#allocation2] sm:$0xff] %vm134_vm2, %v396_v50  ;;  %v3661_v51 = vpop.f32.mrb[5].mxu0 }
 0x443   :  { %v472_v52 = vpop.f32.mrb[2].mxu1  ;;  %v552_v53 = vpop.f32.mrb[6].mxu0 }
 0x444   :  { %477 = vst.msk [vmem:[#allocation2 + $0x8] sm:$0xff] %vm134_vm2, %v472_v52  ;;  %v634_v54 = vmul.f32 0.35355338, %v552_v53  ;;  %v3666_v55 = vpop.f32.mrb[3].mxu1  ;;  %v3671_v56 = vpop.f32.mrb[7].mxu0 }
 0x446   :  { %v636_v57 = vadd.f32 %v4188_v17, %v634_v54 }
 0x447   :  { %v630_v58 = vpop.f32.mrb[4].mxu1 }
 0x448   :  { %v635_v59 = vmul.f32 0.35355338, %v630_v58  ;;  %v3676_v60 = vpop.f32.mrb[5].mxu1  ;;  %v638_v61 = vsel %vm134_vm2, %v636_v57, -inf }
 0x449   :  { %639 = vmax.xlane.f32.xlu1 %v638_v61 }
 0x44a   :  { %v637_v62 = vadd.f32 %v4194_v22, %v635_v59 }
 0x44c   :  { %v641_v63 = vsel %vm134_vm2, %v637_v62, -inf }
 0x44d   :  { %642 = vmax.xlane.f32.xlu0 %v641_v63 }
 0x45a   :  { %660 = vrot.lane.b32.xlu1 %v4164_v12, %s4056_s25 }
 0x45e   :  { %825 = vrot.lane.b32.xlu1 %v4164_v12, %s4057_s26 }
 0x462   :  { %903 = vrot.lane.b32.xlu1 %v4169_v13, %s4057_s26 }
 0x463   :  { %736 = vrot.lane.b32.xlu0 %v4169_v13, %s4056_s25 }
 0x467   :  { %823 = vrot.lane.b32.xlu0 %v4164_v12, %s4058_s27 }
 0x4d6   :  { %v640_v3 = vpop.xlane.xlu1 %639 }
 0x4d7   :  { %v644_v6 = vsub.f32 %v636_v57, %v640_v3 }
 0x4d9   :  { %v646_v15 = vmul.f32 1.442695, %v644_v6 }
 0x4da   :  { %v661_v10 = vpop.permute.xlu1 %660  ;;  %v643_v11 = vpop.xlane.xlu0 %642 }
 0x4db   :  { %v645_v14 = vsub.f32 %v637_v62, %v643_v11  ;;  %3678 = vmatpush3.msra.mxu0 %v661_v10 }
 0x4dc   :  { %3687 = vmatprep.subr.mxu0 %v4050_v8 }
 0x4dd   :  { %v648_v16 = vmul.f32 1.442695, %v645_v14 }
 0x4de   :  { %v737_v18 = vpop.permute.xlu0 %736  ;;  %v826_v24 = vpop.permute.xlu1 %825 }
 0x4df   :  { %3954 = vpow2.f32 %v648_v16  ;;  %3683 = vmatpush3.msra.mxu1 %v737_v18 }
 0x4e0   :  { %3692 = vmatprep.subr.mxu1 %v4050_v8  ;;  %3956 = vpow2.f32 %v646_v15 }
 0x4e2   :  { %v904_v25 = vpop.permute.xlu1 %903  ;;  %v824_v33 = vpop.permute.xlu0 %823 }
 0x4e9   :  { %v3955_v19 = vpop.eup %3954 }
 0x4ea   :  { %v653_v20 = vsel %vm134_vm2, %v3955_v19, 0.0  ;;  %v3957_v21 = vpop.eup %3956 }
 0x4eb   :  { %654 = vadd.xlane.f32.xlu1 %v653_v20  ;;  %v650_v23 = vsel %vm134_vm2, %v3957_v21, 0.0 }
 0x4ef   :  { %651 = vadd.xlane.f32.xlu1 %v650_v23 }
 0x500   :  { %901 = vrot.lane.b32.xlu1 %v4169_v13, %s4058_s27 }
 0x578   :  { %v655_v26 = vpop.xlane.xlu1 %654 }
 0x579   :  { %3958 = vrcp.f32 %v655_v26 }
 0x57c   :  { %v652_v27 = vpop.xlane.xlu1 %651 }
 0x57d   :  { %3960 = vrcp.f32 %v652_v27 }
 0x580   :  { %v902_v32 = vpop.permute.xlu1 %901 }
 0x583   :  { %v3959_v28 = vpop.eup %3958 }
 0x584   :  { %v659_v29 = vmul.f32 %v3959_v28, %v3955_v19 }
 0x586   :  { %3685 = vmatmul.mubr.msk.f32.vlgmr.msra.gmra.mrb[6].mxu1 %vm134_vm2, %v659_v29 }
 0x587   :  { %v3961_v30 = vpop.eup %3960  ;;  %3693 = vmatpush3.xpose.msk.msra.mxu1 %vm134_vm2, %v904_v25  ;;  %3694 = vmatprep.mubr.msk.f32.mxu1 %vm4051_vm1, %v4050_v8 }
 0x588   :  { %v657_v31 = vmul.f32 %v3961_v30, %v3957_v21  ;;  %3702 = vmatprep.subr.mxu1 %v4050_v8 }
 0x58a   :  { %3680 = vmatmul.mubr.msk.f32.vlgmr.msra.gmra.mrb[8].mxu0 %vm134_vm2, %v657_v31  ;;  %3695 = vmatmul.mubr.msk.f32.vlgmr.msra.gmra.mrb[8].mxu1 %vm134_vm2, %v902_v32 }
 0x58b   :  { %3688 = vmatpush3.xpose.msk.msra.mxu0 %vm134_vm2, %v826_v24  ;;  %3689 = vmatprep.mubr.msk.f32.mxu0 %vm4051_vm1, %v4050_v8 }
 0x58c   :  { %3697 = vmatprep.subr.mxu0 %v4050_v8  ;;  %3704 = vmatprep.mubr.msk.f32.mxu1 %vm4051_vm1, %v4050_v8 }
 0x58e   :  { %3690 = vmatmul.mubr.msk.f32.vlgmr.msra.gmra.mrb[10].mxu0 %vm134_vm2, %v824_v33 }
 0x58f   :  { %3699 = vmatprep.mubr.msk.f32.mxu0 %vm4051_vm1, %v4050_v8 }
 0x659   :  { %v4267_v34 = vpop.f32.mrb[6].mxu1 }
 0x65a   :  { %v3686_v35 = vpop.f32.mrb[7].mxu1 }
 0x65d   :  { %v4269_v36 = vpop.f32.mrb[8].mxu0  ;;  %v975_v37 = vpop.f32.mrb[8].mxu1 }
 0x65e   :  { %v980_v38 = vmul.f32 0.35355338, %v975_v37  ;;  %v3681_v39 = vpop.f32.mrb[9].mxu0  ;;  %v3696_v40 = vpop.f32.mrb[9].mxu1 }
 0x660   :  { %v982_v41 = vadd.f32 %v4194_v22, %v980_v38 }
 0x661   :  { %v897_v42 = vpop.f32.mrb[10].mxu0 }
 0x662   :  { %v979_v43 = vmul.f32 0.35355338, %v897_v42  ;;  %v3691_v44 = vpop.f32.mrb[11].mxu0  ;;  %v986_v45 = vsel %vm134_vm2, %v982_v41, -inf }
 0x663   :  { %987 = vmax.xlane.f32.xlu1 %v986_v45 }
 0x664   :  { %v981_v46 = vadd.f32 %v4188_v17, %v979_v43 }
 0x666   :  { %v983_v47 = vsel %vm134_vm2, %v981_v46, -inf }
 0x667   :  { %984 = vmax.xlane.f32.xlu0 %v983_v47 }
 0x674   :  { %1005 = vrot.lane.b32.xlu1 %v4164_v12, %s4059_s28 }
 0x678   :  { %1170 = vrot.lane.b32.xlu1 %v4164_v12, %s4060_s29 }
 0x67c   :  { %1248 = vrot.lane.b32.xlu1 %v4169_v13, %s4060_s29 }
 0x67d   :  { %1081 = vrot.lane.b32.xlu0 %v4169_v13, %s4059_s28 }
 0x680   :  { %1246 = vrot.lane.b32.xlu1 %v4169_v13, %s4061_s30 }
 0x6f0   :  { %v988_v48 = vpop.xlane.xlu1 %987 }
 0x6f1   :  { %v990_v49 = vsub.f32 %v982_v41, %v988_v48 }
 0x6f3   :  { %v993_v50 = vmul.f32 1.442695, %v990_v49 }
 0x6f4   :  { %v1006_v51 = vpop.permute.xlu1 %1005  ;;  %v985_v52 = vpop.xlane.xlu0 %984 }
 0x6f5   :  { %3962 = vpow2.f32 %v993_v50  ;;  %v989_v53 = vsub.f32 %v981_v46, %v985_v52  ;;  %3698 = vmatpush3.msra.mxu0 %v1006_v51 }
 0x6f6   :  { %3707 = vmatprep.subr.mxu0 %v4050_v8 }
 0x6f7   :  { %v991_v54 = vmul.f32 1.442695, %v989_v53 }
 0x6f8   :  { %v1082_v55 = vpop.permute.xlu0 %1081  ;;  %v1171_v62 = vpop.permute.xlu1 %1170 }
 0x6f9   :  { %3964 = vpow2.f32 %v991_v54  ;;  %3703 = vmatpush3.msra.mxu1 %v1082_v55 }
 0x6fa   :  { %3712 = vmatprep.subr.mxu1 %v4050_v8 }
 0x6fc   :  { %v1249_v3 = vpop.permute.xlu1 %1248 }
 0x6ff   :  { %v3963_v56 = vpop.eup %3962 }
 0x700   :  { %v998_v57 = vsel %vm134_vm2, %v3963_v56, 0.0  ;;  %v1247_v14 = vpop.permute.xlu1 %1246 }
 0x701   :  { %999 = vadd.xlane.f32.xlu0 %v998_v57 }
 0x703   :  { %v3965_v58 = vpop.eup %3964 }
 0x704   :  { %v995_v59 = vsel %vm134_vm2, %v3965_v58, 0.0 }
 0x705   :  { %996 = vadd.xlane.f32.xlu0 %v995_v59 }
 0x71b   :  { %1168 = vrot.lane.b32.xlu0 %v4164_v12, %s4061_s30 }
 0x78e   :  { %v1000_v60 = vpop.xlane.xlu0 %999 }
 0x78f   :  { %3966 = vrcp.f32 %v1000_v60 }
 0x792   :  { %v997_v61 = vpop.xlane.xlu0 %996 }
 0x793   :  { %3968 = vrcp.f32 %v997_v61 }
 0x796   :  { %v1169_v15 = vpop.permute.xlu0 %1168 }
 0x799   :  { %v3967_v63 = vpop.eup %3966 }
 0x79a   :  { %v1004_v6 = vmul.f32 %v3967_v63, %v3963_v56 }
 0x79c   :  { %3705 = vmatmul.mubr.msk.f32.vlgmr.msra.gmra.mrb[10].mxu1 %vm134_vm2, %v1004_v6 }
 0x79d   :  { %v3969_v10 = vpop.eup %3968  ;;  %3713 = vmatpush3.xpose.msk.msra.mxu1 %vm134_vm2, %v1249_v3  ;;  %3714 = vmatprep.mubr.msk.f32.mxu1 %vm4051_vm1, %v4050_v8 }
 0x79e   :  { %v1002_v11 = vmul.f32 %v3969_v10, %v3965_v58  ;;  %3722 = vmatprep.subr.mxu1 %v4050_v8 }
 0x7a0   :  { %3700 = vmatmul.mubr.msk.f32.vlgmr.msra.gmra.mrb[12].mxu0 %vm134_vm2, %v1002_v11  ;;  %3715 = vmatmul.mubr.msk.f32.vlgmr.msra.gmra.mrb[12].mxu1 %vm134_vm2, %v1247_v14 }
 0x7a1   :  { %3708 = vmatpush3.xpose.msk.msra.mxu0 %vm134_vm2, %v1171_v62  ;;  %3709 = vmatprep.mubr.msk.f32.mxu0 %vm4051_vm1, %v4050_v8  ;;  %v3926_v62 = vpack.i.bf16 %v4122_v1, %v4117_v0  ;;  %v3931_v0 = vpack.i.bf16 %v4134_v4, %v4127_v2  ;;  %v4345_v1 = vld [vmem:[%s4651_s4 + $0x8] sm:$0xff]  ;;  %v4362_v4 = vld [vmem:[%s4651_s4 + $0x38] sm:$0xff] }
 0x7a2   :  { %3717 = vmatprep.subr.mxu0 %v4050_v8  ;;  %3724 = vmatprep.mubr.msk.f32.mxu1 %vm4051_vm1, %v4050_v8  ;;  %v4357_v2 = vld [vmem:[%s4651_s4 + $0x28] sm:$0xff] }
 0x7a4   :  { %3710 = vmatmul.mubr.msk.f32.vlgmr.msra.gmra.mrb[14].mxu0 %vm134_vm2, %v1169_v15 }
 0x7a5   :  { %3719 = vmatprep.mubr.msk.f32.mxu0 %vm4051_vm1, %v4050_v8 }
 0x86f   :  { %v1153_v16 = vpop.f32.mrb[10].mxu1 }
 0x870   :  { %v3706_v18 = vpop.f32.mrb[11].mxu1 }
 0x873   :  { %v1077_v19 = vpop.f32.mrb[12].mxu0  ;;  %v1320_v20 = vpop.f32.mrb[12].mxu1 }
 0x874   :  { %v1325_v21 = vmul.f32 0.35355338, %v1320_v20  ;;  %v3701_v23 = vpop.f32.mrb[13].mxu0  ;;  %v3716_v24 = vpop.f32.mrb[13].mxu1 }
 0x875   :  { %v32_v23 = vld [vmem:[%s4648_s1] sm:$0xff] }
 0x876   :  { %v1327_v25 = vadd.f32 %v4194_v22, %v1325_v21 }
 0x877   :  { %v1242_v26 = vpop.f32.mrb[14].mxu0 }
 0x878   :  { %v1324_v27 = vmul.f32 0.35355338, %v1242_v26  ;;  %v3711_v28 = vpop.f32.mrb[15].mxu0  ;;  %v1331_v29 = vsel %vm134_vm2, %v1327_v25, -inf  ;;  %v33_v26 = vld [vmem:[%s4648_s1 + $0x8] sm:$0xff] }
 0x879   :  { %1332 = vmax.xlane.f32.xlu1 %v1331_v29 }
 0x87a   :  { %v1326_v30 = vadd.f32 %v4188_v17, %v1324_v27 }
 0x87c   :  { %v1328_v31 = vsel %vm134_vm2, %v1326_v30, -inf }
 0x87d   :  { %1329 = vmax.xlane.f32.xlu0 %v1328_v31 }
 0x88a   :  { %1350 = vrot.lane.b32.xlu1 %v4164_v12, %s4062_s9 }
 0x88e   :  { %814 = vrot.lane.b32.xlu1 %v4269_v36, %s4063_s10 }
 0x892   :  { %816 = vrot.lane.b32.xlu1 %v4267_v34, %s4063_s10 }
 0x896   :  { %1161 = vrot.lane.b32.xlu1 %v1153_v16, %s4064_s11 }
 0x906   :  { %v1333_v22 = vpop.xlane.xlu1 %1332 }
 0x907   :  { %v1335_v32 = vsub.f32 %v1327_v25, %v1333_v22  ;;  %v3879_v25 = vpack.c.bf16 %v4362_v4, %v4357_v2 }
 0x909   :  { %v1338_v17 = vmul.f32 1.442695, %v1335_v32 }
 0x90a   :  { %v1351_v33 = vpop.permute.xlu1 %1350  ;;  %v1330_v35 = vpop.xlane.xlu0 %1329 }
 0x90b   :  { %3970 = vpow2.f32 %v1338_v17  ;;  %v1334_v37 = vsub.f32 %v1326_v30, %v1330_v35  ;;  %3718 = vmatpush3.msra.mxu0 %v1351_v33 }
 0x90d   :  { %v1336_v12 = vmul.f32 1.442695, %v1334_v37 }
 0x90e   :  { %v815_v38 = vpop.permute.xlu1 %814 }
 0x90f   :  { %3972 = vpow2.f32 %v1336_v12  ;;  %821 = vst.msk [vmem:[#allocation2] sm:$0xff] %vm820_vm3, %v815_v38  ;;  %v3494_v38 = vld [vmem:[%s4654_s7] ss:$0 sm:$0xff] }
 0x912   :  { %v817_v36 = vpop.permute.xlu1 %816 }
 0x913   :  { %822 = vst.msk [vmem:[#allocation2 + $0x8] sm:$0xff] %vm820_vm3, %v817_v36 }
 0x915   :  { %v3971_v34 = vpop.eup %3970 }
 0x916   :  { %v1162_v39 = vpop.permute.xlu1 %1161  ;;  %v1343_v40 = vsel %vm134_vm2, %v3971_v34, 0.0 }
 0x917   :  { %1167 = vst.msk [vmem:[#allocation2 + $0x8] sm:$0xff] %vm1165_vm4, %v1162_v39  ;;  %1344 = vadd.xlane.f32.xlu0 %v1343_v40  ;;  %v3495_v40 = vld [vmem:[%s4654_s7 + $0x1] ss:$0 sm:$0xff] }
 0x919   :  { %v3973_v41 = vpop.eup %3972 }
 0x91a   :  { %v1340_v42 = vsel %vm134_vm2, %v3973_v41, 0.0 }
 0x91b   :  { %1341 = vadd.xlane.f32.xlu0 %v1340_v42 }
 0x931   :  { %1426 = vrot.lane.b32.xlu0 %v4169_v13, %s4062_s9 }
 0x935   :  { %1159 = vrot.lane.b32.xlu0 %v1077_v19, %s4064_s11 }
 0x9a4   :  { %v1345_v43 = vpop.xlane.xlu0 %1344 }
 0x9a5   :  { %3974 = vrcp.f32 %v1345_v43 }
 0x9a8   :  { %v1342_v44 = vpop.xlane.xlu0 %1341 }
 0x9a9   :  { %3976 = vrcp.f32 %v1342_v44  ;;  %v4397_v44 = vld [vmem:[%s4653_s6 + $0x1] ss:$0 sm:$0xff] }
 0x9ac   :  { %v1427_v45 = vpop.permute.xlu0 %1426 }
 0x9ad   :  { %3723 = vmatpush3.msra.mxu1 %v1427_v45 }
 0x9af   :  { %v3975_v46 = vpop.eup %3974 }
 0x9b0   :  { %v1349_v47 = vmul.f32 %v3975_v46, %v3971_v34  ;;  %v1160_v48 = vpop.permute.xlu0 %1159 }
 0x9b1   :  { %1166 = vst.msk [vmem:[#allocation2] sm:$0xff] %vm1165_vm4, %v1160_v48 }
 0x9b2   :  { %3725 = vmatmul.mubr.msk.f32.vlgmr.msra.gmra.mrb[14].mxu1 %vm134_vm2, %v1349_v47 }
 0x9b3   :  { %v3977_v49 = vpop.eup %3976  ;;  %3746 = vmatprep.mubr.msk.f32.mxu1 %vm49_vm0, %v32_v23 }
 0x9b4   :  { %v1347_v50 = vmul.f32 %v3977_v49, %v3973_v41 }
 0x9b6   :  { %3720 = vmatmul.mubr.msk.f32.vlgmr.msra.gmra.mrb[16].mxu0 %vm134_vm2, %v1347_v50 }
 0xa85   :  { %v1498_v13 = vpop.f32.mrb[14].mxu1 }
 0xa86   :  { %1506 = vrot.lane.b32.xlu1 %v1498_v13, %s4065_s12  ;;  %v3726_v51 = vpop.f32.mrb[15].mxu1 }
 0xa89   :  { %v1422_v52 = vpop.f32.mrb[16].mxu0 }
 0xa8a   :  { %1504 = vrot.lane.b32.xlu0 %v1422_v52, %s4065_s12  ;;  %v3721_v53 = vpop.f32.mrb[17].mxu0 }
 0xaf8   :  { %v1507_v54 = vpop.permute.xlu1 %1506 }
 0xaf9   :  { %1512 = vst.msk [vmem:[#allocation2 + $0x8] sm:$0xff] %vm1510_vm5, %v1507_v54  ;;  %v4426_v54 = vld [vmem:[%s4650_s3 + $0x1] ss:$0 sm:$0xff] }
 0xafc   :  { %v1505_v55 = vpop.permute.xlu0 %1504 }
 0xafd   :  { %1511 = vst.msk [vmem:[#allocation2] sm:$0xff] %vm1510_vm5, %v1505_v55 }
 0xb00   :  { %v1514_v56 = vld [vmem:[#allocation2 + $0x8] sm:$0xff] }
 0xb01   :  { %v1516_v57 = vadd.f32 %v1514_v56, %v4148_v7 }
 0xb03   :  { %v1522_v58 = vsel %vm49_vm0, %v1516_v57, 0.0 }
 0xb04   :  { %1523 = vadd.xlane.f32.xlu1 %v1522_v58  ;;  %v1513_v59 = vld [vmem:[#allocation2] sm:$0xff] }
 0xb05   :  { %v1515_v60 = vadd.f32 %v1513_v59, %v4139_v5  ;;  %v4431_v58 = vld [vmem:[%s4650_s3] ss:$0 sm:$0xff]  ;;  %s4026_s3 = scalar_lea.vmem %s3455_s20, 256 }
 0xb06   :  { %p4027_p0 = scmp.ne.s32.totalorder %s3455_s20, %s4026_s3  ;;  %p4032_p2 = scmp.lt.s32.totalorder %s4026_s3, %s4026_s3 }
 0xb07   :  { %v1519_v61 = vsel %vm49_vm0, %v1515_v60, 0.0 }
 0xb08   :  { %1520 = vadd.xlane.f32.xlu0 %v1519_v61  ;;  %p4033_p3 = por %p4032_p2, %p4031_p1 }
 0xb0a   :  { %p4034_p4 = pnand %p4033_p3, %p4027_p0 }
 0xb15   :  { %3927 = vrot.lane.b32.xlu1 %v3926_v62, %s4066_s13 }
 0xb19   :  { %1584 = vrot.lane.b32.xlu1 %v4161_v9, %s4066_s13  ;;  %v4350_v9 = vld [vmem:[%s4651_s4 + $0x18] sm:$0xff] }
 0xb1a   :  { %v3875_v19 = vpack.c.bf16 %v4350_v9, %v4345_v1 }
 0xb1c   :  { %3876 = vmatprep.subr.bf16.mxu1 %v3875_v19 }
 0xb1d   :  { %3878 = vmatpush3.bf16.msra.mxu1 %v3875_v19 }
 0xb1e   :  { %3880 = vmatprep.subr.bf16.mxu1 %v3879_v25 }
 0xb21   :  { %3882 = vmatpush3.bf16.msra.mxu1 %v3879_v25 }
 0xb22   :  { %3754 = vmatprep.subr.mxu1 %v4050_v8 }
 0xb24   :  { %3747 = vmatmul.mubr.msk.f32.vlgmr.msra.gmra.mrb[16].mxu1 %vm49_vm0, %v33_v26 }
 0xb25   :  { %3756 = vmatprep.mubr.msk.f32.mxu1 %vm4051_vm1, %v4050_v8 }
 0xb91   :  { %v1524_v63 = vpop.xlane.xlu1 %1523 }
 0xb92   :  { %v1527_v3 = vmul.f32 0.03125, %v1524_v63 }
 0xb94   :  { %v1529_v6 = vsub.f32 %v1516_v57, %v1527_v3 }
 0xb95   :  { %v1521_v7 = vpop.xlane.xlu0 %1520  ;;  %v3928_v18 = vpop.permute.xlu1 %3927 }
 0xb96   :  { %v1526_v10 = vmul.f32 0.03125, %v1521_v7  ;;  %v1531_v11 = vmul.f32 %v1529_v6, %v1529_v6  ;;  %v3930_v20 = vunpack.i.h.bf16 %v3928_v18  ;;  %v3929_v21 = vunpack.i.l.bf16 %v3928_v18 }
 0xb98   :  { %v1528_v14 = vsub.f32 %v1515_v60, %v1526_v10  ;;  %v1535_v15 = vsel %vm49_vm0, %v1531_v11, 0.0  ;;  %v3867_v24 = vpack.c.bf16 %v3930_v20, %v3929_v21 }
 0xb99   :  { %1536 = vadd.xlane.f32.xlu0 %v1535_v15  ;;  %v1585_v49 = vpop.permute.xlu1 %1584 }
 0xb9a   :  { %v1530_v5 = vmul.f32 %v1528_v14, %v1528_v14  ;;  %3868 = vmatprep.subr.bf16.mxu0 %v3867_v24 }
 0xb9b   :  { %3870 = vmatpush3.bf16.msra.mxu0 %v3867_v24 }
 0xb9c   :  { %v1532_v16 = vsel %vm49_vm0, %v1530_v5, 0.0 }
 0xb9d   :  { %1533 = vadd.xlane.f32.xlu0 %v1532_v16 }
 0xbb3   :  { %3932 = vrot.lane.b32.xlu0 %v3931_v0, %s4066_s13 }
 0xbf7   :  { %v3748_v45 = vpop.f32.mrb[16].mxu1 }
 0xbf8   :  { %v4400_v46 = vadd.f32 %v3748_v45, %v4397_v44  ;;  %v1751_v47 = vpop.f32.mrb[17].mxu1 }
 0xbf9   :  { %v4403_v48 = vadd.f32 %v4397_v44, %v1751_v47 }
 0xbfa   :  { %3755 = vmatpush3.xpose.msk.msra.mxu1 %vm134_vm2, %v4400_v46 }
 0xbfb   :  { %3764 = vmatprep.subr.mxu1 %v4050_v8 }
 0xc26   :  { %v1537_v27 = vpop.xlane.xlu0 %1536 }
 0xc27   :  { %v1539_v28 = vmul.f32 0.03125, %v1537_v27 }
 0xc29   :  { %v1541_v29 = vadd.f32 1e-12, %v1539_v28 }
 0xc2a   :  { %v1534_v30 = vpop.xlane.xlu0 %1533 }
 0xc2b   :  { %3978 = vrsqrt.f32 %v1541_v29  ;;  %v1538_v31 = vmul.f32 0.03125, %v1534_v30 }
 0xc2d   :  { %v1540_v22 = vadd.f32 1e-12, %v1538_v31 }
 0xc2e   :  { %v3933_v32 = vpop.permute.xlu0 %3932 }
 0xc2f   :  { %3980 = vrsqrt.f32 %v1540_v22  ;;  %v3935_v17 = vunpack.i.h.bf16 %v3933_v32  ;;  %v3934_v33 = vunpack.i.l.bf16 %v3933_v32 }
 0xc31   :  { %v3871_v35 = vpack.c.bf16 %v3935_v17, %v3934_v33 }
 0xc33   :  { %3872 = vmatprep.subr.bf16.mxu0 %v3871_v35 }
 0xc34   :  { %3874 = vmatpush3.bf16.msra.mxu0 %v3871_v35 }
 0xc35   :  { %v3979_v37 = vpop.eup %3978  ;;  %3749 = vmatprep.subr.mxu0 %v4050_v8 }
 0xc36   :  { %v1545_v12 = vmul.f32 %v3979_v37, %v1529_v6 }
 0xc38   :  { %v1551_v39 = vmul.f32 %v3494_v38, %v1545_v12 }
 0xc39   :  { %v3981_v36 = vpop.eup %3980 }
 0xc3a   :  { %v1544_v34 = vmul.f32 %v3981_v36, %v1528_v14  ;;  %v4386_v43 = vadd.f32 %v3495_v40, %v1551_v39 }
 0xc3c   :  { %v1550_v41 = vmul.f32 %v3494_v38, %v1544_v34 }
 0xc3e   :  { %v4384_v42 = vadd.f32 %v3495_v40, %v1550_v41 }
 0xc40   :  { %3735 = vmatprep.mubr.msk.f32.mxu0 %vm49_vm0, %v4384_v42 }
 0xc41   :  { %3736 = vmatmul.mubr.msk.f32.vlgmr.msra.gmra.mrb[18].mxu0 %vm49_vm0, %v4386_v43 }
 0xc42   :  { %3751 = vmatprep.mubr.msk.f32.mxu0 %vm4051_vm1, %v4050_v8  ;;  %3750 = vmatpush3.xpose.msk.msra.mxu0 %vm134_vm2, %v4403_v48 }
 0xc43   :  { %3759 = vmatprep.subr.mxu0 %v4050_v8 }
 0xd14   :  { %v3737_v50 = vpop.f32.mrb[18].mxu0 }
 0xd15   :  { %v4411_v13 = vadd.f32 %v3737_v50, %v1585_v49  ;;  %v1659_v51 = vpop.f32.mrb[19].mxu0 }
 0xd16   :  { %v4413_v52 = vadd.f32 %v1659_v51, %v1585_v49 }
 0xd17   :  { %3757 = vmatmul.mubr.msk.f32.vlgmr.msra.gmra.mrb[18].mxu1 %vm134_vm2, %v4411_v13 }
 0xd18   :  { %3752 = vmatmul.mubr.msk.f32.vlgmr.msra.gmra.mrb[20].mxu0 %vm134_vm2, %v4413_v52  ;;  %3766 = vmatprep.mubr.msk.f32.mxu1 %vm4051_vm1, %v4050_v8 }
 0xd19   :  { %3761 = vmatprep.mubr.msk.f32.mxu0 %vm4051_vm1, %v4050_v8 }
 0xdea   :  { %v1908_v53 = vpop.f32.mrb[18].mxu1 }
 0xdeb   :  { %v1913_v55 = vmul.f32 0.35355338, %v1908_v53  ;;  %v1832_v56 = vpop.f32.mrb[20].mxu0  ;;  %v3758_v57 = vpop.f32.mrb[19].mxu1 }
 0xdec   :  { %v1912_v59 = vmul.f32 0.35355338, %v1832_v56  ;;  %v3753_v60 = vpop.f32.mrb[21].mxu0 }
 0xded   :  { %v1927_v61 = vadd.f32 %v4426_v54, %v1913_v55 }
 0xdee   :  { %v1926_v62 = vadd.f32 %v4431_v58, %v1912_v59 }
 0xdef   :  { %v1931_v63 = vsel %vm134_vm2, %v1927_v61, -inf }
 0xdf0   :  { %1932 = vmax.xlane.f32.xlu0 %v1931_v63  ;;  %v1928_v3 = vsel %vm134_vm2, %v1926_v62, -inf }
 0xdf1   :  { %1929 = vmax.xlane.f32.xlu1 %v1928_v3 }
 0xe02   :  { %2026 = vrot.lane.b32.xlu1 %v4400_v46, %s4052_s0 }
 0xe06   :  { %1950 = vrot.lane.b32.xlu0 %v4403_v48, %s4052_s0  ;;  %2106 = vrot.lane.b32.xlu1 %v4403_v48, %s4055_s2 }
 0xe7d   :  { %v1933_v6 = vpop.xlane.xlu0 %1932 }
 0xe7e   :  { %v1935_v7 = vsub.f32 %v1927_v61, %v1933_v6  ;;  %v1930_v10 = vpop.xlane.xlu1 %1929 }
 0xe7f   :  { %v1934_v11 = vsub.f32 %v1926_v62, %v1930_v10 }
 0xe80   :  { %v1938_v14 = vmul.f32 1.442695, %v1935_v7 }
 0xe81   :  { %v1936_v15 = vmul.f32 1.442695, %v1934_v11  ;;  %v1951_v5 = vpop.permute.xlu0 %1950 }
 0xe82   :  { %3982 = vpow2.f32 %v1938_v14  ;;  %3760 = vmatpush3.msra.mxu0 %v1951_v5  ;;  %v2027_v16 = vpop.permute.xlu1 %2026 }
 0xe83   :  { %3984 = vpow2.f32 %v1936_v15  ;;  %3765 = vmatpush3.msra.mxu1 %v2027_v16  ;;  %3769 = vmatprep.subr.mxu0 %v4050_v8 }
 0xe84   :  { %3774 = vmatprep.subr.mxu1 %v4050_v8 }
 0xe86   :  { %v2107_v21 = vpop.permute.xlu1 %2106 }
 0xe8c   :  { %v3983_v0 = vpop.eup %3982 }
 0xe8d   :  { %v3985_v18 = vpop.eup %3984  ;;  %v1943_v19 = vsel %vm134_vm2, %v3983_v0, 0.0 }
 0xe8e   :  { %1944 = vadd.xlane.f32.xlu1 %v1943_v19  ;;  %v1940_v20 = vsel %vm134_vm2, %v3985_v18, 0.0 }
 0xe8f   :  { %1941 = vadd.xlane.f32.xlu0 %v1940_v20 }
 0xe9f   :  { %2104 = vrot.lane.b32.xlu1 %v4413_v52, %s4055_s2 }
 0xea5   :  { %2184 = vrot.lane.b32.xlu0 %v4400_v46, %s4055_s2 }
 0xea9   :  { %2182 = vrot.lane.b32.xlu0 %v4411_v13, %s4055_s2 }
 0xf1b   :  { %v1945_v23 = vpop.xlane.xlu1 %1944 }
 0xf1c   :  { %3986 = vrcp.f32 %v1945_v23  ;;  %v1942_v24 = vpop.xlane.xlu0 %1941 }
 0xf1d   :  { %3988 = vrcp.f32 %v1942_v24 }
 0xf1f   :  { %v2105_v31 = vpop.permute.xlu1 %2104 }
 0xf20   :  { %v2185_v26 = vpop.permute.xlu0 %2184 }
 0xf24   :  { %v2183_v30 = vpop.permute.xlu0 %2182 }
 0xf26   :  { %v3987_v25 = vpop.eup %3986 }
 0xf27   :  { %v3989_v27 = vpop.eup %3988  ;;  %v1949_v28 = vmul.f32 %v3987_v25, %v3983_v0 }
 0xf28   :  { %v1947_v29 = vmul.f32 %v3989_v27, %v3985_v18 }
 0xf29   :  { %3767 = vmatmul.mubr.msk.f32.vlgmr.msra.gmra.mrb[20].mxu1 %vm134_vm2, %v1949_v28 }
 0xf2a   :  { %3775 = vmatpush3.xpose.msk.msra.mxu1 %vm134_vm2, %v2185_v26  ;;  %3762 = vmatmul.mubr.msk.f32.vlgmr.msra.gmra.mrb[22].mxu0 %vm134_vm2, %v1947_v29 }
 0xf2b   :  { %3770 = vmatpush3.xpose.msk.msra.mxu0 %vm134_vm2, %v2107_v21  ;;  %3776 = vmatprep.mubr.msk.f32.mxu1 %vm4051_vm1, %v4050_v8 }
 0xf2c   :  { %3771 = vmatprep.mubr.msk.f32.mxu0 %vm4051_vm1, %v4050_v8  ;;  %3779 = vmatprep.subr.mxu0 %v4050_v8 }
 0xf2d   :  { %3777 = vmatmul.mubr.msk.f32.vlgmr.msra.gmra.mrb[22].mxu1 %vm134_vm2, %v2183_v30  ;;  %3784 = vmatprep.subr.mxu1 %v4050_v8 }
 0xf2e   :  { %3772 = vmatmul.mubr.msk.f32.vlgmr.msra.gmra.mrb[24].mxu0 %vm134_vm2, %v2105_v31  ;;  %3786 = vmatprep.mubr.msk.f32.mxu1 %vm4051_vm1, %v4050_v8 }
 0xf2f   :  { %3781 = vmatprep.mubr.msk.f32.mxu0 %vm4051_vm1, %v4050_v8 }
 0xffc   :  { %v2098_v22 = vpop.f32.mrb[20].mxu1 }
 0xffd   :  { %2103 = vst.msk [vmem:[#allocation2 + $0x8] sm:$0xff] %vm134_vm2, %v2098_v22  ;;  %v2022_v32 = vpop.f32.mrb[22].mxu0  ;;  %v3768_v17 = vpop.f32.mrb[21].mxu1 }
 0xffe   :  { %2102 = vst.msk [vmem:[#allocation2] sm:$0xff] %vm134_vm2, %v2022_v32  ;;  %v3763_v33 = vpop.f32.mrb[23].mxu0 }
0x1000   :  { %v2256_v35 = vpop.f32.mrb[22].mxu1 }
0x1001   :  { %v2261_v37 = vmul.f32 0.35355338, %v2256_v35  ;;  %v2178_v12 = vpop.f32.mrb[24].mxu0  ;;  %v3778_v38 = vpop.f32.mrb[23].mxu1 }
0x1002   :  { %v2260_v36 = vmul.f32 0.35355338, %v2178_v12  ;;  %v3773_v34 = vpop.f32.mrb[25].mxu0 }
0x1003   :  { %v2263_v39 = vadd.f32 %v4426_v54, %v2261_v37 }
0x1004   :  { %v2262_v40 = vadd.f32 %v4431_v58, %v2260_v36 }
0x1005   :  { %v2267_v41 = vsel %vm134_vm2, %v2263_v39, -inf }
0x1006   :  { %2268 = vmax.xlane.f32.xlu0 %v2267_v41  ;;  %v2264_v45 = vsel %vm134_vm2, %v2262_v40, -inf }
0x1007   :  { %2265 = vmax.xlane.f32.xlu1 %v2264_v45 }
0x1018   :  { %2362 = vrot.lane.b32.xlu1 %v4400_v46, %s4054_s24 }
0x101c   :  { %2286 = vrot.lane.b32.xlu0 %v4403_v48, %s4054_s24  ;;  %2450 = vrot.lane.b32.xlu1 %v4403_v48, %s4058_s27 }
0x1093   :  { %v2269_v47 = vpop.xlane.xlu0 %2268 }
0x1094   :  { %v2271_v49 = vsub.f32 %v2263_v39, %v2269_v47  ;;  %v2266_v50 = vpop.xlane.xlu1 %2265 }
0x1095   :  { %v2270_v51 = vsub.f32 %v2262_v40, %v2266_v50 }
0x1096   :  { %v2274_v53 = vmul.f32 1.442695, %v2271_v49 }
0x1097   :  { %v2272_v55 = vmul.f32 1.442695, %v2270_v51  ;;  %v2287_v56 = vpop.permute.xlu0 %2286 }
0x1098   :  { %3990 = vpow2.f32 %v2274_v53  ;;  %3780 = vmatpush3.msra.mxu0 %v2287_v56  ;;  %v2363_v57 = vpop.permute.xlu1 %2362 }
0x1099   :  { %3992 = vpow2.f32 %v2272_v55  ;;  %3785 = vmatpush3.msra.mxu1 %v2363_v57  ;;  %3789 = vmatprep.subr.mxu0 %v4050_v8 }
0x109a   :  { %3794 = vmatprep.subr.mxu1 %v4050_v8 }
0x109c   :  { %v2451_v63 = vpop.permute.xlu1 %2450 }
0x10a2   :  { %v3991_v59 = vpop.eup %3990 }
0x10a3   :  { %v3993_v60 = vpop.eup %3992  ;;  %v2279_v61 = vsel %vm134_vm2, %v3991_v59, 0.0 }
0x10a4   :  { %2280 = vadd.xlane.f32.xlu1 %v2279_v61  ;;  %v2276_v62 = vsel %vm134_vm2, %v3993_v60, 0.0 }
0x10a5   :  { %2277 = vadd.xlane.f32.xlu0 %v2276_v62 }
0x10b5   :  { %2448 = vrot.lane.b32.xlu1 %v4413_v52, %s4058_s27 }
0x10bb   :  { %2528 = vrot.lane.b32.xlu0 %v4400_v46, %s4058_s27 }
0x10bf   :  { %2526 = vrot.lane.b32.xlu0 %v4411_v13, %s4058_s27 }
0x1131   :  { %v2281_v3 = vpop.xlane.xlu1 %2280 }
0x1132   :  { %3994 = vrcp.f32 %v2281_v3  ;;  %v2278_v6 = vpop.xlane.xlu0 %2277 }
0x1133   :  { %3996 = vrcp.f32 %v2278_v6 }
0x1135   :  { %v2449_v16 = vpop.permute.xlu1 %2448 }
0x1136   :  { %v2529_v10 = vpop.permute.xlu0 %2528 }
0x113a   :  { %v2527_v5 = vpop.permute.xlu0 %2526 }
0x113c   :  { %v3995_v7 = vpop.eup %3994 }
0x113d   :  { %v3997_v11 = vpop.eup %3996  ;;  %v2285_v14 = vmul.f32 %v3995_v7, %v3991_v59 }
0x113e   :  { %v2283_v15 = vmul.f32 %v3997_v11, %v3993_v60 }
0x113f   :  { %3787 = vmatmul.mubr.msk.f32.vlgmr.msra.gmra.mrb[24].mxu1 %vm134_vm2, %v2285_v14 }
0x1140   :  { %3795 = vmatpush3.xpose.msk.msra.mxu1 %vm134_vm2, %v2529_v10  ;;  %3782 = vmatmul.mubr.msk.f32.vlgmr.msra.gmra.mrb[26].mxu0 %vm134_vm2, %v2283_v15 }
0x1141   :  { %3790 = vmatpush3.xpose.msk.msra.mxu0 %vm134_vm2, %v2451_v63  ;;  %3796 = vmatprep.mubr.msk.f32.mxu1 %vm4051_vm1, %v4050_v8 }
0x1142   :  { %3791 = vmatprep.mubr.msk.f32.mxu0 %vm4051_vm1, %v4050_v8  ;;  %3799 = vmatprep.subr.mxu0 %v4050_v8 }
0x1143   :  { %3797 = vmatmul.mubr.msk.f32.vlgmr.msra.gmra.mrb[26].mxu1 %vm134_vm2, %v2527_v5  ;;  %3804 = vmatprep.subr.mxu1 %v4050_v8 }
0x1144   :  { %3792 = vmatmul.mubr.msk.f32.vlgmr.msra.gmra.mrb[28].mxu0 %vm134_vm2, %v2449_v16  ;;  %3806 = vmatprep.mubr.msk.f32.mxu1 %vm4051_vm1, %v4050_v8 }
0x1145   :  { %3801 = vmatprep.mubr.msk.f32.mxu0 %vm4051_vm1, %v4050_v8 }
0x1212   :  { %v4507_v0 = vpop.f32.mrb[24].mxu1 }
0x1213   :  { %v4509_v18 = vpop.f32.mrb[26].mxu0  ;;  %v3788_v19 = vpop.f32.mrb[25].mxu1 }
0x1214   :  { %v3783_v20 = vpop.f32.mrb[27].mxu0 }
0x1216   :  { %v2600_v21 = vpop.f32.mrb[26].mxu1 }
0x1217   :  { %v2605_v23 = vmul.f32 0.35355338, %v2600_v21  ;;  %v2522_v24 = vpop.f32.mrb[28].mxu0  ;;  %v3798_v25 = vpop.f32.mrb[27].mxu1 }
0x1218   :  { %v2604_v26 = vmul.f32 0.35355338, %v2522_v24  ;;  %v3793_v27 = vpop.f32.mrb[29].mxu0 }
0x1219   :  { %v2607_v28 = vadd.f32 %v4426_v54, %v2605_v23 }
0x121a   :  { %v2606_v29 = vadd.f32 %v4431_v58, %v2604_v26 }
0x121b   :  { %v2611_v30 = vsel %vm134_vm2, %v2607_v28, -inf }
0x121c   :  { %2612 = vmax.xlane.f32.xlu0 %v2611_v30  ;;  %v2608_v31 = vsel %vm134_vm2, %v2606_v29, -inf }
0x121d   :  { %2609 = vmax.xlane.f32.xlu1 %v2608_v31 }
0x122e   :  { %2706 = vrot.lane.b32.xlu1 %v4400_v46, %s4057_s26 }
0x1232   :  { %2630 = vrot.lane.b32.xlu0 %v4403_v48, %s4057_s26  ;;  %2794 = vrot.lane.b32.xlu1 %v4403_v48, %s4061_s30 }
0x12a9   :  { %v2613_v22 = vpop.xlane.xlu0 %2612 }
0x12aa   :  { %v2615_v32 = vsub.f32 %v2607_v28, %v2613_v22  ;;  %v2610_v17 = vpop.xlane.xlu1 %2609 }
0x12ab   :  { %v2614_v33 = vsub.f32 %v2606_v29, %v2610_v17 }
0x12ac   :  { %v2618_v35 = vmul.f32 1.442695, %v2615_v32 }
0x12ad   :  { %v2616_v37 = vmul.f32 1.442695, %v2614_v33  ;;  %v2631_v12 = vpop.permute.xlu0 %2630 }
0x12ae   :  { %3998 = vpow2.f32 %v2618_v35  ;;  %3800 = vmatpush3.msra.mxu0 %v2631_v12  ;;  %v2707_v38 = vpop.permute.xlu1 %2706 }
0x12af   :  { %4000 = vpow2.f32 %v2616_v37  ;;  %3805 = vmatpush3.msra.mxu1 %v2707_v38  ;;  %3809 = vmatprep.subr.mxu0 %v4050_v8 }
0x12b0   :  { %3814 = vmatprep.subr.mxu1 %v4050_v8 }
0x12b2   :  { %v2795_v41 = vpop.permute.xlu1 %2794 }
0x12b8   :  { %v3999_v36 = vpop.eup %3998 }
0x12b9   :  { %v4001_v34 = vpop.eup %4000  ;;  %v2623_v39 = vsel %vm134_vm2, %v3999_v36, 0.0 }
0x12ba   :  { %2624 = vadd.xlane.f32.xlu1 %v2623_v39  ;;  %v2620_v40 = vsel %vm134_vm2, %v4001_v34, 0.0 }
0x12bb   :  { %2621 = vadd.xlane.f32.xlu0 %v2620_v40 }
0x12cb   :  { %2792 = vrot.lane.b32.xlu1 %v4413_v52, %s4061_s30 }
0x12d1   :  { %2872 = vrot.lane.b32.xlu0 %v4400_v46, %s4061_s30 }
0x12d5   :  { %2870 = vrot.lane.b32.xlu0 %v4411_v13, %s4061_s30 }
0x1347   :  { %v2625_v45 = vpop.xlane.xlu1 %2624 }
0x1348   :  { %4002 = vrcp.f32 %v2625_v45  ;;  %v2622_v47 = vpop.xlane.xlu0 %2621 }
0x1349   :  { %4004 = vrcp.f32 %v2622_v47 }
0x134b   :  { %v2793_v52 = vpop.permute.xlu1 %2792 }
0x134c   :  { %v2873_v50 = vpop.permute.xlu0 %2872 }
0x1350   :  { %v2871_v13 = vpop.permute.xlu0 %2870 }
0x1352   :  { %v4003_v49 = vpop.eup %4002 }
0x1353   :  { %v4005_v51 = vpop.eup %4004  ;;  %v2629_v53 = vmul.f32 %v4003_v49, %v3999_v36 }
0x1354   :  { %v2627_v55 = vmul.f32 %v4005_v51, %v4001_v34 }
0x1355   :  { %3807 = vmatmul.mubr.msk.f32.vlgmr.msra.gmra.mrb[28].mxu1 %vm134_vm2, %v2629_v53 }
0x1356   :  { %3815 = vmatpush3.xpose.msk.msra.mxu1 %vm134_vm2, %v2873_v50  ;;  %3802 = vmatmul.mubr.msk.f32.vlgmr.msra.gmra.mrb[30].mxu0 %vm134_vm2, %v2627_v55 }
0x1357   :  { %3810 = vmatpush3.xpose.msk.msra.mxu0 %vm134_vm2, %v2795_v41  ;;  %3816 = vmatprep.mubr.msk.f32.mxu1 %vm4051_vm1, %v4050_v8 }
0x1358   :  { %3811 = vmatprep.mubr.msk.f32.mxu0 %vm4051_vm1, %v4050_v8  ;;  %3824 = vmatprep.subr.mxu1 %v4050_v8 }
0x1359   :  { %3817 = vmatmul.mubr.msk.f32.vlgmr.msra.gmra.mrb[30].mxu1 %vm134_vm2, %v2871_v13  ;;  %3819 = vmatprep.subr.mxu0 %v4050_v8 }
0x135a   :  { %3812 = vmatmul.mubr.msk.f32.vlgmr.msra.gmra.mrb[32].mxu0 %vm134_vm2, %v2793_v52  ;;  %3826 = vmatprep.mubr.msk.f32.mxu1 %vm4051_vm1, %v4050_v8 }
0x135b   :  { %3821 = vmatprep.mubr.msk.f32.mxu0 %vm4051_vm1, %v4050_v8 }
0x1428   :  { %v2778_v56 = vpop.f32.mrb[28].mxu1 }
0x1429   :  { %v2702_v57 = vpop.f32.mrb[30].mxu0  ;;  %v3808_v59 = vpop.f32.mrb[29].mxu1 }
0x142a   :  { %v3803_v60 = vpop.f32.mrb[31].mxu0 }
0x142c   :  { %v2944_v61 = vpop.f32.mrb[30].mxu1 }
0x142d   :  { %v2949_v62 = vmul.f32 0.35355338, %v2944_v61  ;;  %v2866_v63 = vpop.f32.mrb[32].mxu0  ;;  %v3818_v3 = vpop.f32.mrb[31].mxu1 }
0x142e   :  { %v2948_v6 = vmul.f32 0.35355338, %v2866_v63  ;;  %v3813_v7 = vpop.f32.mrb[33].mxu0 }
0x142f   :  { %v2951_v10 = vadd.f32 %v4426_v54, %v2949_v62 }
0x1430   :  { %v2950_v11 = vadd.f32 %v4431_v58, %v2948_v6 }
0x1431   :  { %v2955_v14 = vsel %vm134_vm2, %v2951_v10, -inf }
0x1432   :  { %2956 = vmax.xlane.f32.xlu0 %v2955_v14  ;;  %v2952_v15 = vsel %vm134_vm2, %v2950_v11, -inf }
0x1433   :  { %2953 = vmax.xlane.f32.xlu1 %v2952_v15 }
0x14bf   :  { %v2957_v8 = vpop.xlane.xlu0 %2956 }
0x14c0   :  { %v2959_v5 = vsub.f32 %v2951_v10, %v2957_v8  ;;  %v2954_v16 = vpop.xlane.xlu1 %2953 }
0x14c1   :  { %v2958_v19 = vsub.f32 %v2950_v11, %v2954_v16  ;;  %v3528_v11 = vld [vmem:[%s4654_s7 + $0x2] ss:$0 sm:$0xff] }
0x14c2   :  { %v2962_v20 = vmul.f32 1.442695, %v2959_v5  ;;  %v3529_v5 = vld [vmem:[%s4654_s7 + $0x3] ss:$0 sm:$0xff] }
0x14c3   :  { %v2960_v21 = vmul.f32 1.442695, %v2958_v19 }
0x14c4   :  { %4006 = vpow2.f32 %v2962_v20 }
0x14c5   :  { %4008 = vpow2.f32 %v2960_v21 }
0x14ce   :  { %v4007_v23 = vpop.eup %4006 }
0x14cf   :  { %v4009_v24 = vpop.eup %4008  ;;  %v2967_v54 = vsel %vm134_vm2, %v4007_v23, 0.0 }
0x14d0   :  { %2968 = vadd.xlane.f32.xlu1 %v2967_v54  ;;  %v2964_v58 = vsel %vm134_vm2, %v4009_v24, 0.0 }
0x14d1   :  { %2965 = vadd.xlane.f32.xlu0 %v2964_v58  ;;  %v3310_v58 = vld [vmem:[%s4652_s5 + $0x10] sm:$0xff] }
0x14e1   :  { %3050 = vrot.lane.b32.xlu1 %v4400_v46, %s4060_s29 }
0x14e5   :  { %2440 = vrot.lane.b32.xlu1 %v4509_v18, %s4063_s10 }
0x14e7   :  { %2974 = vrot.lane.b32.xlu0 %v4403_v48, %s4060_s29 }
0x14e9   :  { %2784 = vrot.lane.b32.xlu1 %v2702_v57, %s4064_s11 }
0x14eb   :  { %2442 = vrot.lane.b32.xlu0 %v4507_v0, %s4063_s10 }
0x14ef   :  { %2786 = vrot.lane.b32.xlu0 %v2778_v56, %s4064_s11  ;;  %v3936_v56 = vpack.i.bf16 %v4350_v9, %v4345_v1 }
0x155d   :  { %v2969_v25 = vpop.xlane.xlu1 %2968 }
0x155e   :  { %4010 = vrcp.f32 %v2969_v25  ;;  %v2966_v26 = vpop.xlane.xlu0 %2965  ;;  %v3311_v25 = vld [vmem:[%s4652_s5 + $0x18] sm:$0xff] }
0x155f   :  { %4012 = vrcp.f32 %v2966_v26  ;;  %v3895_v26 = vpack.c.bf16 %v3311_v25, %v3310_v58 }
0x1561   :  { %v3051_v27 = vpop.permute.xlu1 %3050 }
0x1562   :  { %v2975_v28 = vpop.permute.xlu0 %2974  ;;  %3825 = vmatpush3.msra.mxu1 %v3051_v27  ;;  %v3312_v27 = vld [vmem:[%s4652_s5 + $0x20] sm:$0xff] }
0x1563   :  { %3820 = vmatpush3.msra.mxu0 %v2975_v28  ;;  %v3313_v28 = vld [vmem:[%s4652_s5 + $0x28] sm:$0xff] }
0x1565   :  { %v2441_v46 = vpop.permute.xlu1 %2440 }
0x1566   :  { %2446 = vst.msk [vmem:[#allocation2] sm:$0xff] %vm820_vm3, %v2441_v46  ;;  %v2443_v18 = vpop.permute.xlu0 %2442  ;;  %v3899_v46 = vpack.c.bf16 %v3313_v28, %v3312_v27 }
0x1567   :  { %2447 = vst.msk [vmem:[#allocation2 + $0x8] sm:$0xff] %vm820_vm3, %v2443_v18  ;;  %v3314_v18 = vld [vmem:[%s4652_s5 + $0x30] sm:$0xff] }
0x1568   :  { %v4011_v48 = vpop.eup %4010 }
0x1569   :  { %v4013_v29 = vpop.eup %4012  ;;  %v2973_v30 = vmul.f32 %v4011_v48, %v4007_v23  ;;  %v2785_v0 = vpop.permute.xlu1 %2784  ;;  %v3308_v23 = vld [vmem:[%s4652_s5] sm:$0xff]  ;;  %v3315_v48 = vld [vmem:[%s4652_s5 + $0x38] sm:$0xff] }
0x156a   :  { %v2971_v31 = vmul.f32 %v4013_v29, %v4009_v24  ;;  %2790 = vst.msk [vmem:[#allocation2] sm:$0xff] %vm1165_vm4, %v2785_v0  ;;  %v2787_v22 = vpop.permute.xlu0 %2786  ;;  %v3309_v24 = vld [vmem:[%s4652_s5 + $0x8] sm:$0xff]  ;;  %v3903_v29 = vpack.c.bf16 %v3315_v48, %v3314_v18 }
0x156b   :  { %2791 = vst.msk [vmem:[#allocation2 + $0x8] sm:$0xff] %vm1165_vm4, %v2787_v22  ;;  %3827 = vmatmul.mubr.msk.f32.vlgmr.msra.gmra.mrb[32].mxu1 %vm134_vm2, %v2973_v30  ;;  %v3891_v54 = vpack.c.bf16 %v3309_v24, %v3308_v23 }
0x156c   :  { %3822 = vmatmul.mubr.msk.f32.vlgmr.msra.gmra.mrb[34].mxu0 %vm134_vm2, %v2971_v31 }
0x156d   :  { %3892 = vmatprep.subr.bf16.mxu1 %v3891_v54 }
0x156e   :  { %3894 = vmatpush3.bf16.msra.mxu1 %v3891_v54 }
0x156f   :  { %3896 = vmatprep.subr.bf16.mxu1 %v3895_v26 }
0x1572   :  { %3898 = vmatpush3.bf16.msra.mxu1 %v3895_v26 }
0x1573   :  { %3900 = vmatprep.subr.bf16.mxu1 %v3899_v46 }
0x1576   :  { %3902 = vmatpush3.bf16.msra.mxu1 %v3899_v46 }
0x1577   :  { %3904 = vmatprep.subr.bf16.mxu1 %v3903_v29 }
0x157a   :  { %3906 = vmatpush3.bf16.msra.mxu1 %v3903_v29 }
0x163e   :  { %v3122_v32 = vpop.f32.mrb[32].mxu1 }
0x163f   :  { %3130 = vrot.lane.b32.xlu0 %v3122_v32, %s4065_s12  ;;  %v3046_v17 = vpop.f32.mrb[34].mxu0  ;;  %v3828_v33 = vpop.f32.mrb[33].mxu1 }
0x1640   :  { %3128 = vrot.lane.b32.xlu1 %v3046_v17, %s4065_s12  ;;  %v3823_v35 = vpop.f32.mrb[35].mxu0 }
0x16b1   :  { %v3131_v37 = vpop.permute.xlu0 %3130 }
0x16b2   :  { %3135 = vst.msk [vmem:[#allocation2 + $0x8] sm:$0xff] %vm1510_vm5, %v3131_v37  ;;  %v3129_v12 = vpop.permute.xlu1 %3128 }
0x16b3   :  { %3134 = vst.msk [vmem:[#allocation2] sm:$0xff] %vm1510_vm5, %v3129_v12 }
0x16b9   :  { %v3137_v38 = vld [vmem:[#allocation2 + $0x8] sm:$0xff] }
0x16ba   :  { %v3139_v36 = vadd.f32 %v3137_v38, %v4386_v43  ;;  %v3136_v34 = vld [vmem:[#allocation2] sm:$0xff] }
0x16bb   :  { %v3138_v39 = vadd.f32 %v3136_v34, %v4384_v42  ;;  %v3941_v42 = vpack.i.bf16 %v4362_v4, %v4357_v2 }
0x16bc   :  { %v3145_v40 = vsel %vm49_vm0, %v3139_v36, 0.0 }
0x16bd   :  { %3146 = vadd.xlane.f32.xlu0 %v3145_v40  ;;  %v3142_v41 = vsel %vm49_vm0, %v3138_v39, 0.0 }
0x16be   :  { %3143 = vadd.xlane.f32.xlu1 %v3142_v41 }
0x174a   :  { %v3147_v45 = vpop.xlane.xlu0 %3146 }
0x174b   :  { %v3149_v47 = vmul.f32 0.03125, %v3147_v45  ;;  %v3144_v49 = vpop.xlane.xlu1 %3143 }
0x174c   :  { %v3148_v50 = vmul.f32 0.03125, %v3144_v49 }
0x174d   :  { %v3151_v51 = vsub.f32 %v3139_v36, %v3149_v47 }
0x174e   :  { %v3150_v53 = vsub.f32 %v3138_v39, %v3148_v50 }
0x174f   :  { %v3153_v55 = vmul.f32 %v3151_v51, %v3151_v51 }
0x1750   :  { %v3152_v13 = vmul.f32 %v3150_v53, %v3150_v53 }
0x1751   :  { %v3157_v52 = vsel %vm49_vm0, %v3153_v55, 0.0 }
0x1752   :  { %3158 = vadd.xlane.f32.xlu1 %v3157_v52  ;;  %v3154_v43 = vsel %vm49_vm0, %v3152_v13, 0.0  ;;  %v3533_v13 = vld [vmem:[%s4653_s6 + $0x2] ss:$0 sm:$0xff] }
0x1753   :  { %3155 = vadd.xlane.f32.xlu0 %v3154_v43 }
0x1763   :  { %3942 = vrot.lane.b32.xlu1 %v3941_v42, %s4053_s23 }
0x1767   :  { %3206 = vrot.lane.b32.xlu1 %v4397_v44, %s4053_s23 }
0x1769   :  { %3937 = vrot.lane.b32.xlu0 %v3936_v56, %s4053_s23 }
0x17df   :  { %v3159_v57 = vpop.xlane.xlu1 %3158 }
0x17e0   :  { %v3161_v59 = vmul.f32 0.03125, %v3159_v57  ;;  %v3156_v60 = vpop.xlane.xlu0 %3155 }
0x17e1   :  { %v3160_v61 = vmul.f32 0.03125, %v3156_v60 }
0x17e2   :  { %v3163_v62 = vadd.f32 1e-12, %v3161_v59 }
0x17e3   :  { %v3162_v63 = vadd.f32 1e-12, %v3160_v61  ;;  %v3943_v3 = vpop.permute.xlu1 %3942 }
0x17e4   :  { %4014 = vrsqrt.f32 %v3163_v62  ;;  %v3938_v6 = vpop.permute.xlu0 %3937  ;;  %v3945_v2 = vunpack.i.h.bf16 %v3943_v3  ;;  %v3944_v4 = vunpack.i.l.bf16 %v3943_v3 }
0x17e5   :  { %4016 = vrsqrt.f32 %v3162_v63  ;;  %v3940_v7 = vunpack.i.h.bf16 %v3938_v6  ;;  %v3939_v10 = vunpack.i.l.bf16 %v3938_v6 }
0x17e6   :  { %v3887_v9 = vpack.c.bf16 %v3945_v2, %v3944_v4 }
0x17e7   :  { %v3883_v1 = vpack.c.bf16 %v3940_v7, %v3939_v10  ;;  %v3207_v30 = vpop.permute.xlu1 %3206 }
0x17e9   :  { %3884 = vmatprep.subr.bf16.mxu0 %v3883_v1 }
0x17ea   :  { %3886 = vmatpush3.bf16.msra.mxu0 %v3883_v1 }
0x17eb   :  { %3888 = vmatprep.subr.bf16.mxu0 %v3887_v9 }
0x17ee   :  { %v4015_v44 = vpop.eup %4014  ;;  %3890 = vmatpush3.bf16.msra.mxu0 %v3887_v9 }
0x17ef   :  { %v4017_v14 = vpop.eup %4016  ;;  %v3167_v15 = vmul.f32 %v4015_v44, %v3151_v51 }
0x17f0   :  { %v3166_v8 = vmul.f32 %v4017_v14, %v3150_v53 }
0x17f1   :  { %v3173_v16 = vmul.f32 %v3528_v11, %v3167_v15 }
0x17f2   :  { %v3172_v19 = vmul.f32 %v3528_v11, %v3166_v8 }
0x17f3   :  { %v3179_v21 = vadd.f32 %v3529_v5, %v3173_v16 }
0x17f4   :  { %v3178_v20 = vadd.f32 %v3529_v5, %v3172_v19  ;;  %v3536_v19 = vld [vmem:[%s4654_s7 + $0x4] ss:$0 sm:$0xff] }
0x17f6   :  { %3837 = vmatprep.mubr.msk.f32.mxu0 %vm49_vm0, %v3178_v20 }
0x17f7   :  { %3838 = vmatmul.mubr.msk.f32.vlgmr.msra.gmra.mrb[36].mxu0 %vm49_vm0, %v3179_v21 }
0x18ca   :  { %v3839_v0 = vpop.f32.mrb[36].mxu0 }
0x18cb   :  { %v3287_v31 = vadd.f32 %v3839_v0, %v3207_v30  ;;  %v3281_v22 = vpop.f32.mrb[37].mxu0 }
0x18cc   :  { %v3282_v32 = vadd.f32 %v3281_v22, %v3207_v30 }
0x18cd   :  { %v3293_v17 = vmul.f32 0.044715, %v3287_v31  ;;  %v3291_v51 = vmul.f32 0.5, %v3287_v31 }
0x18ce   :  { %v3292_v33 = vmul.f32 0.044715, %v3282_v32  ;;  %v3290_v49 = vmul.f32 0.5, %v3282_v32 }
0x18cf   :  { %v3295_v35 = vmul.f32 %v3293_v17, %v3287_v31 }
0x18d0   :  { %v3294_v37 = vmul.f32 %v3292_v33, %v3282_v32 }
0x18d1   :  { %v3297_v12 = vmul.f32 %v3295_v35, %v3287_v31 }
0x18d2   :  { %v3296_v38 = vmul.f32 %v3294_v37, %v3282_v32 }
0x18d3   :  { %v3299_v36 = vadd.f32 %v3297_v12, %v3287_v31 }
0x18d4   :  { %v3298_v34 = vadd.f32 %v3296_v38, %v3282_v32 }
0x18d5   :  { %v3301_v39 = vmul.f32 0.7978846, %v3299_v36 }
0x18d6   :  { %v3300_v40 = vmul.f32 0.7978846, %v3298_v34 }
0x18d7   :  { %4018 = vtanh.f32 %v3301_v39 }
0x18d8   :  { %4020 = vtanh.f32 %v3300_v40 }
0x18e1   :  { %v4019_v41 = vpop.eup %4018 }
0x18e2   :  { %v4021_v45 = vpop.eup %4020  ;;  %v3305_v47 = vadd.f32 1.0, %v4019_v41 }
0x18e3   :  { %v3304_v50 = vadd.f32 1.0, %v4021_v45 }
0x18e4   :  { %v3307_v55 = vmul.f32 %v3305_v47, %v3291_v51 }
0x18e5   :  { %v3306_v53 = vmul.f32 %v3304_v50, %v3290_v49 }
0x18e7   :  { %3856 = vmatprep.mubr.msk.f32.mxu1 %vm3323_vm6, %v3306_v53 }
0x18e8   :  { %3857 = vmatmul.mubr.msk.f32.vlgmr.msra.gmra.mrb[34].mxu1 %vm3323_vm6, %v3307_v55 }
0x19bb   :  { %v3858_v52 = vpop.f32.mrb[34].mxu1 }
0x19bc   :  { %v3402_v43 = vadd.f32 %v3858_v52, %v3533_v13  ;;  %v3396_v42 = vpop.f32.mrb[35].mxu1 }
0x19bd   :  { %v3397_v56 = vadd.f32 %v3533_v13, %v3396_v42 }
0x19be   :  { %v3406_v57 = vadd.f32 %v3402_v43, %v3179_v21  ;;  %v3537_v21 = vld [vmem:[%s4654_s7 + $0x5] ss:$0 sm:$0xff] }
0x19bf   :  { %v3405_v59 = vadd.f32 %v3397_v56, %v3178_v20 }
0x19c0   :  { %v3412_v60 = vsel %vm49_vm0, %v3406_v57, 0.0 }
0x19c1   :  { %3413 = vadd.xlane.f32.xlu1 %v3412_v60  ;;  %v3409_v61 = vsel %vm49_vm0, %v3405_v59, 0.0 }
0x19c2   :  { %3410 = vadd.xlane.f32.xlu0 %v3409_v61 }
0x1a4e   :  { %v3414_v62 = vpop.xlane.xlu1 %3413 }
0x1a4f   :  { %v3416_v63 = vmul.f32 0.03125, %v3414_v62  ;;  %v3411_v3 = vpop.xlane.xlu0 %3410 }
0x1a50   :  { %v3415_v6 = vmul.f32 0.03125, %v3411_v3 }
0x1a51   :  { %v3418_v2 = vsub.f32 %v3406_v57, %v3416_v63 }
0x1a52   :  { %v3417_v4 = vsub.f32 %v3405_v59, %v3415_v6 }
0x1a53   :  { %v3420_v1 = vmul.f32 %v3418_v2, %v3418_v2 }
0x1a54   :  { %v3419_v7 = vmul.f32 %v3417_v4, %v3417_v4 }
0x1a55   :  { %v3424_v9 = vsel %vm49_vm0, %v3420_v1, 0.0 }
0x1a56   :  { %v3421_v10 = vsel %vm49_vm0, %v3419_v7, 0.0 }
0x1a57   :  { %3422 = vadd.xlane.f32.xlu0 %v3421_v10 }
0x1a5b   :  { %3425 = vadd.xlane.f32.xlu0 %v3424_v9 }
0x1ae4   :  { %v3423_v44 = vpop.xlane.xlu0 %3422 }
0x1ae5   :  { %v3427_v11 = vmul.f32 0.03125, %v3423_v44 }
0x1ae7   :  { %v3429_v14 = vadd.f32 1e-12, %v3427_v11 }
0x1ae8   :  { %v3426_v15 = vpop.xlane.xlu0 %3425 }
0x1ae9   :  { %4022 = vrsqrt.f32 %v3429_v14  ;;  %v3428_v8 = vmul.f32 0.03125, %v3426_v15 }
0x1aeb   :  { %v3430_v5 = vadd.f32 1e-12, %v3428_v8 }
0x1aed   :  { %4024 = vrsqrt.f32 %v3430_v5 }
0x1af3   :  { %v4023_v16 = vpop.eup %4022 }
0x1af4   :  { %v3433_v20 = vmul.f32 %v4023_v16, %v3417_v4 }
0x1af6   :  { %v3439_v23 = vmul.f32 %v3536_v19, %v3433_v20 }
0x1af7   :  { %v4025_v24 = vpop.eup %4024 }
0x1af8   :  { %v3434_v54 = vmul.f32 %v4025_v24, %v3418_v2  ;;  %v3445_v58 = vadd.f32 %v3537_v21, %v3439_v23 }
0x1afa   :  { %v3440_v25 = vmul.f32 %v3536_v19, %v3434_v54  ;;  %3447 = vst.msk [vmem:[#allocation3] sm:$0xff] %vm49_vm0, %v3445_v58 }
0x1afc   :  { %v3446_v26 = vadd.f32 %v3537_v21, %v3440_v25 }
0x1afe   :  { %3448 = vst.msk [vmem:[#allocation3 + $0x8] sm:$0xff] %vm49_vm0, %v3446_v26 }
0x1aff   :  { %4037 = shalt.err (!%p4034_p4)
}
0x1b00   :  { %s4038_s23 = scalar_lea.hbm %s4655_s8, 256 }
0x1b01   :  { %p4039_p5 = scmp.ne.s32.totalorder %s4655_s8, %s4038_s23  ;;  %p4042_p6 = scmp.lt.u32.totalorder %s4038_s23, %s4655_s8 }
0x1b03   :  { %p4044_p7 = pnand %p4042_p6, %p4039_p5 }
0x1b05   :  { %4047 = shalt.err (!%p4044_p7)
}
0x1b06   :  { %s4068_s29 = smov 128  }
0x1b07   :  { %3460 = dma.vmem_to_hbm [thread:$0]  %s3455_s20, 256, %s4655_s8, [#allocation4], %s4068_s29, %s4068_s29, %s4063_s10  }
0x1b08   :  { %4048 = dma.done.wait [#allocation4], 256  }
0x1b09   :  { %4049 = vsyncadd [#allocation4], 4294967040 }
0x1b0a   :  { %3464 = vsyncpa [#allocation4], 1 }

</bundles_post_ra>
